<compile_context>
chip_gen: v7x
topology: tpu7x:2x2x1
jax: 0.10.0
libtpu: 0.0.40
codegen_flags: <defaults>
</compile_context>

<pallas_src>
import functools

import numpy as np
import jax
import jax.numpy as jnp
from jax.experimental import pallas as pl
from jax.experimental.pallas import tpu as pltpu


# ----------------------------------------------------------------------------
# Hardware-aware tile planning
# ----------------------------------------------------------------------------
def _vmem_capacity_bytes():
    try:
        info = pltpu.get_tpu_info()
        cap = getattr(info, "vmem_capacity_bytes", None)
        if cap:
            return int(cap)
    except Exception:
        pass
    return 64 * 1024 * 1024  # conservative: v7x per-TensorCore VMEM


def _plan_tiles(C, Hp, Wp):
    """Choose (row_tile, padded Hp, lane-dense padded Wp, vmem_limit_bytes)."""
    # Lane-dense output width: every store becomes an unmasked vst.
    Wp_pad = ((Wp + 127) // 128) * 128

    cap = _vmem_capacity_bytes()
    # Per spatial element of a block:
    #   2 outputs x 2 pipeline buffers x C x 4 B  (BlockSpec double-buffering)
    # + ~12 live f32 (th, Wp_pad) temporaries inside the kernel (~48 B).
    bytes_per_spatial_elem = 16 * C + 48
    max_spatial = max(1, (cap * 2 // 5) // bytes_per_spatial_elem)

    th = max(8, (max_spatial // Wp_pad) // 8 * 8)
    if Hp >= 16:
        # Keep >= 2 row tiles so both v7x TensorCores get work (no-op on v5e/v6e).
        th = min(th, max(8, (((Hp + 1) // 2) + 7) // 8 * 8))
    th = min(th, max(8, ((Hp + 7) // 8) * 8))

    Hp_pad = ((Hp + th - 1) // th) * th          # no ragged edge blocks
    need = bytes_per_spatial_elem * th * Wp_pad  # rough per-step VMEM need
    vmem_limit = int(min(cap * 3 // 4, need + (16 << 20)))
    return th, Hp_pad, Wp_pad, vmem_limit


# ----------------------------------------------------------------------------
# Pallas kernel: one grid step builds a (C, th, Wp_pad) slab of the RSC kernel.
# Scalars [k_c, cos(k_c z), sin(k_c z)] come from SMEM via scalar prefetch.
# ----------------------------------------------------------------------------
def _rsc_build_kernel(C, th, wp, x0, xstep, y0, ystep, z, scale,
                      scal_ref, kr_ref, ki_ref):
    i = pl.program_id(0)  # row-tile index

    # ---- wavelength-invariant spatial factors (computed ONCE per tile) -----
    # Coordinates from iota (no mesh DMA). Reproduces
    # linspace(-N*dx/2, N*dx/2, N) = start + idx * (N*dx/(N-1)).
    row_i = jax.lax.broadcasted_iota(jnp.int32, (th, wp), 0) + i * th
    col_i = jax.lax.broadcasted_iota(jnp.int32, (th, wp), 1)
    x = x0 + row_i.astype(jnp.float32) * xstep
    y = y0 + col_i.astype(jnp.float32) * ystep

    rho2 = x * x + y * y
    r2 = rho2 + (z * z)
    inv_r = jax.lax.rsqrt(r2)                 # single EUP op, shared by all C
    r = r2 * inv_r                            # r = r2 / sqrt(r2)
    # Cancellation-safe (r - z): keeps the per-pixel phase small so f32 sin/cos
    # retain precision even though k*r ~ 1e5 rad.
    dr = rho2 / (r + z)
    amp = (scale * z / (2.0 * np.pi)) * (inv_r * inv_r)   # dx*dy folded in

    # ---- per-wavelength part: sin/cos + a few VALU ops per c ---------------
    for c in range(C):                        # C is static -> fully unrolled
        kw = scal_ref[c]                      # 2*pi / lambda_c
        c0 = scal_ref[C + c]                  # cos(k_c * z), computed in f64 on host
        s0 = scal_ref[2 * C + c]              # sin(k_c * z)
        ph = kw * dr                          # k*(r - z), small argument
        cp = jnp.cos(ph)
        sp = jnp.sin(ph)
        cr = c0 * cp - s0 * sp                # cos(k*r)
        sr = s0 * cp + c0 * sp                # sin(k*r)
        # (cos + i sin) * (1/r - i k) * amp
        kr_ref[c] = amp * (cr * inv_r + kw * sr)
        ki_ref[c] = amp * (sr * inv_r - kw * cr)


def build_rsc_kernel(scal, *, C, Hp, Wp, x0, xstep, y0, ystep, z, scale):
    """Returns (kr, ki): real/imag parts of the RSC kernel, shape (C, Hp, Wp) f32,
    already scaled by dx*dy."""
    th, Hp_pad, Wp_pad, vmem_limit = _plan_tiles(C, Hp, Wp)
    n_row = Hp_pad // th

    kern = functools.partial(
        _rsc_build_kernel, C, th, Wp_pad,
        float(x0), float(xstep), float(y0), float(ystep), float(z), float(scale))

    kr, ki = pl.pallas_call(
        kern,
        out_shape=(jax.ShapeDtypeStruct((C, Hp_pad, Wp_pad), jnp.float32),
                   jax.ShapeDtypeStruct((C, Hp_pad, Wp_pad), jnp.float32)),
        grid_spec=pltpu.PrefetchScalarGridSpec(
            num_scalar_prefetch=1,            # [k, cos(kz), sin(kz)] -> SMEM
            grid=(n_row,),
            in_specs=[],                      # no tensor inputs: coords from iota
            out_specs=(pl.BlockSpec((C, th, Wp_pad), lambda i, s: (0, i, 0)),
                       pl.BlockSpec((C, th, Wp_pad), lambda i, s: (0, i, 0))),
        ),
        compiler_params=pltpu.CompilerParams(
            dimension_semantics=("parallel",),
            vmem_limit_bytes=vmem_limit),
    )(scal)

    # Crop the row/lane padding that only existed for dense stores.
    return kr[:, :Hp, :Wp], ki[:, :Hp, :Wp]


# ----------------------------------------------------------------------------
# Precompute the (input-independent) kernel spectrum: fft2(RSC_kernel) * dx * dy.
# Cache/reuse this across forward calls with the same geometry.
# ----------------------------------------------------------------------------
def precompute_rsc_spectrum(wavelengths, *, h, w, dx, dy, z):
    pad_h = int(np.floor(h / 2))               # DEFAULT_PADDING_SCALE = [1, 1]
    pad_w = int(np.floor(w / 2))
    Hp, Wp = h + 2 * pad_h, w + 2 * pad_w

    # create_spatial_grid (reference uses dx for BOTH axes; reproduced as-is).
    x0 = -Hp * dx / 2.0
    xstep = (Hp * dx) / (Hp - 1) if Hp > 1 else 0.0
    y0 = -Wp * dx / 2.0
    ystep = (Wp * dx) / (Wp - 1) if Wp > 1 else 0.0

    # Per-wavelength scalars in float64 on the host (precompute-only, cheap):
    # exp(i*k*r) = exp(i*k*z) * exp(i*k*(r-z)); only the small k*(r-z) part is
    # evaluated in f32 inside the kernel.
    wl = np.asarray(wavelengths, dtype=np.float64).reshape(-1)
    C = int(wl.shape[0])
    k64 = 2.0 * np.pi / wl
    phz = k64 * float(z)
    scal = jnp.asarray(
        np.concatenate([k64, np.cos(phz), np.sin(phz)]).astype(np.float32))

    # TODO(synk): check_RS_minimum_z() is a diagnostic print that references an
    # undefined `mm` in the reference; omitted (no numerical effect on forward).
    kr, ki = build_rsc_kernel(
        scal, C=C, Hp=Hp, Wp=Wp, x0=x0, xstep=xstep, y0=y0, ystep=ystep,
        z=float(z), scale=float(dx) * float(dy))

    # TODO(synk): FFT has no Pallas TPU primitive; fft2 stays in XLA.
    return jnp.fft.fft2(jax.lax.complex(kr, ki))   # (C, Hp, Wp) c64, dx*dy folded


# ----------------------------------------------------------------------------
# Forward: pad -> fft2 -> (fused complex multiply with cached kernel spectrum)
#          -> ifft2 -> crop
# ----------------------------------------------------------------------------
@jax.jit
def _rsc_apply(field_data, kernel_spectrum):
    B, C, H, W = field_data.shape
    Hp, Wp = kernel_spectrum.shape[-2:]

    # Reference intent of "U[..., 0:H, 0:W] = field_data": zero pad to (Hp, Wp).
    # jnp.pad gives a single fused pad op instead of zero-fill + scatter.
    U = jnp.pad(field_data.astype(jnp.complex64),
                ((0, 0), (0, 0), (0, Hp - H), (0, Wp - W)))

    # Spectral multiply kept in plain jnp so XLA fuses it into ONE elementwise pass
    # over the complex arrays (dx*dy already folded into kernel_spectrum).
    spec = jnp.fft.fft2(U) * kernel_spectrum       # broadcast over batch

    return jnp.fft.ifft2(spec)[..., H - 1:, W - 1:]


def rsc_prop(field_data, wavelengths, dx, dy, z, kernel_spectrum=None):
    """
    field_data : complex64 (B, C, H, W), C == len(wavelengths)
    wavelengths: float32 (C,)
    kernel_spectrum: optional cached result of precompute_rsc_spectrum(...)
    """
    B, C, H, W = field_data.shape
    if kernel_spectrum is None:
        kernel_spectrum = precompute_rsc_spectrum(
            wavelengths, h=H, w=W, dx=float(dx), dy=float(dy), z=float(z))
    return _rsc_apply(field_data, kernel_spectrum)


if __name__ == "__main__":
    key = jax.random.PRNGKey(0)
    B, C, H, W = 2, 3, 16, 16                      # C = number of wavelengths
    k1, k2 = jax.random.split(key)
    real = jax.random.normal(k1, (B, C, H, W), dtype=jnp.float32)
    imag = jax.random.normal(k2, (B, C, H, W), dtype=jnp.float32)
    field_data = (real + 1j * imag).astype(jnp.complex64)

    wavelengths = jnp.array([450e-9, 550e-9, 650e-9], dtype=jnp.float32)
    dx = 8e-6          # field.spacing[0]
    dy = 8e-6          # field.spacing[1]
    z = 0.02           # propagation distance

    # Geometry-only kernel spectrum computed once (cacheable across forward calls).
    K_spec = precompute_rsc_spectrum(wavelengths, h=H, w=W, dx=dx, dy=dy, z=z)
    jax.block_until_ready(K_spec)

    out = rsc_prop(field_data, wavelengths, dx, dy, z, kernel_spectrum=K_spec)
    jax.block_until_ready(out)

    # crop [..., H-1:, W-1:] of the (2H, 2W) padded result -> (H+1, W+1)
    assert out.shape == (B, C, H + 1, W + 1), out.shape
    assert out.dtype == jnp.complex64
    assert bool(jnp.isfinite(out.real).all()) and bool(jnp.isfinite(out.imag).all())

    print("KERNEL_OK")
</pallas_src>

<mosaic_0001>
module attributes {stable_mosaic.version = 11 : i64} {
  func.func @_rsc_build_kernel(%arg0: i32, %arg1: memref<9xf32, #tpu.memory_space<smem>>, %arg2: memref<3x16x128xf32, #tpu.memory_space<vmem>>, %arg3: memref<3x16x128xf32, #tpu.memory_space<vmem>>) attributes {dimension_semantics = [#tpu.dimension_semantics<parallel>], iteration_bounds = array<i64: 2>, scalar_prefetch = 1 : i64, scratch_operands = 0 : i64, tpu.core_type = #tpu.core_type<tc>, window_params = [{transform_indices = @transform_0, window_bounds = array<i64: 3, 16, 128>}, {transform_indices = @transform_1, window_bounds = array<i64: 3, 16, 128>}]} {
    %0 = tpu.iota {dimensions = array<i32: 0>} : vector<16x128xi32>
    %c16_i32 = arith.constant 16 : i32
    %1 = arith.muli %arg0, %c16_i32 : i32
    %2 = vector.broadcast %1 : i32 to vector<16x128xi32>
    %3 = arith.addi %0, %2 : vector<16x128xi32>
    %4 = tpu.iota {dimensions = array<i32: 1>} : vector<16x128xi32>
    %5 = arith.sitofp %3 : vector<16x128xi32> to vector<16x128xf32>
    %cst = arith.constant 8.25806455E-6 : f32
    %6 = vector.broadcast %cst : f32 to vector<16x128xf32>
    %7 = arith.mulf %5, %6 : vector<16x128xf32>
    %cst_0 = arith.constant -1.280000e-04 : f32
    %8 = vector.broadcast %cst_0 : f32 to vector<16x128xf32>
    %9 = arith.addf %8, %7 : vector<16x128xf32>
    %10 = arith.sitofp %4 : vector<16x128xi32> to vector<16x128xf32>
    %cst_1 = arith.constant 8.25806455E-6 : f32
    %11 = vector.broadcast %cst_1 : f32 to vector<16x128xf32>
    %12 = arith.mulf %10, %11 : vector<16x128xf32>
    %cst_2 = arith.constant -1.280000e-04 : f32
    %13 = vector.broadcast %cst_2 : f32 to vector<16x128xf32>
    %14 = arith.addf %13, %12 : vector<16x128xf32>
    %15 = arith.mulf %9, %9 : vector<16x128xf32>
    %16 = arith.mulf %14, %14 : vector<16x128xf32>
    %17 = arith.addf %15, %16 : vector<16x128xf32>
    %cst_3 = arith.constant 4.000000e-04 : f32
    %18 = vector.broadcast %cst_3 : f32 to vector<16x128xf32>
    %19 = arith.addf %17, %18 : vector<16x128xf32>
    %20 = math.rsqrt %19 : vector<16x128xf32>
    %21 = arith.mulf %19, %20 : vector<16x128xf32>
    %cst_4 = arith.constant 2.000000e-02 : f32
    %22 = vector.broadcast %cst_4 : f32 to vector<16x128xf32>
    %23 = arith.addf %21, %22 : vector<16x128xf32>
    %24 = arith.divf %17, %23 : vector<16x128xf32>
    %25 = arith.mulf %20, %20 : vector<16x128xf32>
    %cst_5 = arith.constant 2.03718322E-13 : f32
    %26 = vector.broadcast %cst_5 : f32 to vector<16x128xf32>
    %27 = arith.mulf %26, %25 : vector<16x128xf32>
    %c0 = arith.constant 0 : index
    %28 = memref.load %arg1[%c0] : memref<9xf32, #tpu.memory_space<smem>>
    %c3 = arith.constant 3 : index
    %29 = memref.load %arg1[%c3] : memref<9xf32, #tpu.memory_space<smem>>
    %c6 = arith.constant 6 : index
    %30 = memref.load %arg1[%c6] : memref<9xf32, #tpu.memory_space<smem>>
    %31 = vector.broadcast %28 : f32 to vector<16x128xf32>
    %32 = arith.mulf %31, %24 : vector<16x128xf32>
    %33 = math.cos %32 : vector<16x128xf32>
    %34 = math.sin %32 : vector<16x128xf32>
    %35 = vector.broadcast %29 : f32 to vector<16x128xf32>
    %36 = arith.mulf %35, %33 : vector<16x128xf32>
    %37 = vector.broadcast %30 : f32 to vector<16x128xf32>
    %38 = arith.mulf %37, %34 : vector<16x128xf32>
    %39 = arith.subf %36, %38 : vector<16x128xf32>
    %40 = vector.broadcast %30 : f32 to vector<16x128xf32>
    %41 = arith.mulf %40, %33 : vector<16x128xf32>
    %42 = vector.broadcast %29 : f32 to vector<16x128xf32>
    %43 = arith.mulf %42, %34 : vector<16x128xf32>
    %44 = arith.addf %41, %43 : vector<16x128xf32>
    %45 = arith.mulf %39, %20 : vector<16x128xf32>
    %46 = vector.broadcast %28 : f32 to vector<16x128xf32>
    %47 = arith.mulf %46, %44 : vector<16x128xf32>
    %48 = arith.addf %45, %47 : vector<16x128xf32>
    %49 = arith.mulf %27, %48 : vector<16x128xf32>
    %c0_6 = arith.constant 0 : index
    %c0_7 = arith.constant 0 : index
    %c0_8 = arith.constant 0 : index
    %50 = vector.load %arg2[%c0_6, %c0_7, %c0_8] : memref<3x16x128xf32, #tpu.memory_space<vmem>>, vector<1x16x128xf32>
    %51 = vector.shape_cast %50 : vector<1x16x128xf32> to vector<16x128xf32>
    %52 = vector.shape_cast %49 : vector<16x128xf32> to vector<1x16x128xf32>
    tpu.vector_store %arg2[%c0_6, %c0_7, %c0_8], %52 {strides = array<i32>} : memref<3x16x128xf32, #tpu.memory_space<vmem>>, vector<1x16x128xf32>,
    %53 = arith.mulf %44, %20 : vector<16x128xf32>
    %54 = vector.broadcast %28 : f32 to vector<16x128xf32>
    %55 = arith.mulf %54, %39 : vector<16x128xf32>
    %56 = arith.subf %53, %55 : vector<16x128xf32>
    %57 = arith.mulf %27, %56 : vector<16x128xf32>
    %c0_9 = arith.constant 0 : index
    %c0_10 = arith.constant 0 : index
    %c0_11 = arith.constant 0 : index
    %58 = vector.load %arg3[%c0_9, %c0_10, %c0_11] : memref<3x16x128xf32, #tpu.memory_space<vmem>>, vector<1x16x128xf32>
    %59 = vector.shape_cast %58 : vector<1x16x128xf32> to vector<16x128xf32>
    %60 = vector.shape_cast %57 : vector<16x128xf32> to vector<1x16x128xf32>
    tpu.vector_store %arg3[%c0_9, %c0_10, %c0_11], %60 {strides = array<i32>} : memref<3x16x128xf32, #tpu.memory_space<vmem>>, vector<1x16x128xf32>,
    %c1 = arith.constant 1 : index
    %61 = memref.load %arg1[%c1] : memref<9xf32, #tpu.memory_space<smem>>
    %c4 = arith.constant 4 : index
    %62 = memref.load %arg1[%c4] : memref<9xf32, #tpu.memory_space<smem>>
    %c7 = arith.constant 7 : index
    %63 = memref.load %arg1[%c7] : memref<9xf32, #tpu.memory_space<smem>>
    %64 = vector.broadcast %61 : f32 to vector<16x128xf32>
    %65 = arith.mulf %64, %24 : vector<16x128xf32>
    %66 = math.cos %65 : vector<16x128xf32>
    %67 = math.sin %65 : vector<16x128xf32>
    %68 = vector.broadcast %62 : f32 to vector<16x128xf32>
    %69 = arith.mulf %68, %66 : vector<16x128xf32>
    %70 = vector.broadcast %63 : f32 to vector<16x128xf32>
    %71 = arith.mulf %70, %67 : vector<16x128xf32>
    %72 = arith.subf %69, %71 : vector<16x128xf32>
    %73 = vector.broadcast %63 : f32 to vector<16x128xf32>
    %74 = arith.mulf %73, %66 : vector<16x128xf32>
    %75 = vector.broadcast %62 : f32 to vector<16x128xf32>
    %76 = arith.mulf %75, %67 : vector<16x128xf32>
    %77 = arith.addf %74, %76 : vector<16x128xf32>
    %78 = arith.mulf %72, %20 : vector<16x128xf32>
    %79 = vector.broadcast %61 : f32 to vector<16x128xf32>
    %80 = arith.mulf %79, %77 : vector<16x128xf32>
    %81 = arith.addf %78, %80 : vector<16x128xf32>
    %82 = arith.mulf %27, %81 : vector<16x128xf32>
    %c1_12 = arith.constant 1 : index
    %c0_13 = arith.constant 0 : index
    %c0_14 = arith.constant 0 : index
    %83 = vector.load %arg2[%c1_12, %c0_13, %c0_14] : memref<3x16x128xf32, #tpu.memory_space<vmem>>, vector<1x16x128xf32>
    %84 = vector.shape_cast %83 : vector<1x16x128xf32> to vector<16x128xf32>
    %85 = vector.shape_cast %82 : vector<16x128xf32> to vector<1x16x128xf32>
    tpu.vector_store %arg2[%c1_12, %c0_13, %c0_14], %85 {strides = array<i32>} : memref<3x16x128xf32, #tpu.memory_space<vmem>>, vector<1x16x128xf32>,
    %86 = arith.mulf %77, %20 : vector<16x128xf32>
    %87 = vector.broadcast %61 : f32 to vector<16x128xf32>
    %88 = arith.mulf %87, %72 : vector<16x128xf32>
    %89 = arith.subf %86, %88 : vector<16x128xf32>
    %90 = arith.mulf %27, %89 : vector<16x128xf32>
    %c1_15 = arith.constant 1 : index
    %c0_16 = arith.constant 0 : index
    %c0_17 = arith.constant 0 : index
    %91 = vector.load %arg3[%c1_15, %c0_16, %c0_17] : memref<3x16x128xf32, #tpu.memory_space<vmem>>, vector<1x16x128xf32>
    %92 = vector.shape_cast %91 : vector<1x16x128xf32> to vector<16x128xf32>
    %93 = vector.shape_cast %90 : vector<16x128xf32> to vector<1x16x128xf32>
    tpu.vector_store %arg3[%c1_15, %c0_16, %c0_17], %93 {strides = array<i32>} : memref<3x16x128xf32, #tpu.memory_space<vmem>>, vector<1x16x128xf32>,
    %c2 = arith.constant 2 : index
    %94 = memref.load %arg1[%c2] : memref<9xf32, #tpu.memory_space<smem>>
    %c5 = arith.constant 5 : index
    %95 = memref.load %arg1[%c5] : memref<9xf32, #tpu.memory_space<smem>>
    %c8 = arith.constant 8 : index
    %96 = memref.load %arg1[%c8] : memref<9xf32, #tpu.memory_space<smem>>
    %97 = vector.broadcast %94 : f32 to vector<16x128xf32>
    %98 = arith.mulf %97, %24 : vector<16x128xf32>
    %99 = math.cos %98 : vector<16x128xf32>
    %100 = math.sin %98 : vector<16x128xf32>
    %101 = vector.broadcast %95 : f32 to vector<16x128xf32>
    %102 = arith.mulf %101, %99 : vector<16x128xf32>
    %103 = vector.broadcast %96 : f32 to vector<16x128xf32>
    %104 = arith.mulf %103, %100 : vector<16x128xf32>
    %105 = arith.subf %102, %104 : vector<16x128xf32>
    %106 = vector.broadcast %96 : f32 to vector<16x128xf32>
    %107 = arith.mulf %106, %99 : vector<16x128xf32>
    %108 = vector.broadcast %95 : f32 to vector<16x128xf32>
    %109 = arith.mulf %108, %100 : vector<16x128xf32>
    %110 = arith.addf %107, %109 : vector<16x128xf32>
    %111 = arith.mulf %105, %20 : vector<16x128xf32>
    %112 = vector.broadcast %94 : f32 to vector<16x128xf32>
    %113 = arith.mulf %112, %110 : vector<16x128xf32>
    %114 = arith.addf %111, %113 : vector<16x128xf32>
    %115 = arith.mulf %27, %114 : vector<16x128xf32>
    %c2_18 = arith.constant 2 : index
    %c0_19 = arith.constant 0 : index
    %c0_20 = arith.constant 0 : index
    %116 = vector.load %arg2[%c2_18, %c0_19, %c0_20] : memref<3x16x128xf32, #tpu.memory_space<vmem>>, vector<1x16x128xf32>
    %117 = vector.shape_cast %116 : vector<1x16x128xf32> to vector<16x128xf32>
    %118 = vector.shape_cast %115 : vector<16x128xf32> to vector<1x16x128xf32>
    tpu.vector_store %arg2[%c2_18, %c0_19, %c0_20], %118 {strides = array<i32>} : memref<3x16x128xf32, #tpu.memory_space<vmem>>, vector<1x16x128xf32>,
    %119 = arith.mulf %110, %20 : vector<16x128xf32>
    %120 = vector.broadcast %94 : f32 to vector<16x128xf32>
    %121 = arith.mulf %120, %105 : vector<16x128xf32>
    %122 = arith.subf %119, %121 : vector<16x128xf32>
    %123 = arith.mulf %27, %122 : vector<16x128xf32>
    %c2_21 = arith.constant 2 : index
    %c0_22 = arith.constant 0 : index
    %c0_23 = arith.constant 0 : index
    %124 = vector.load %arg3[%c2_21, %c0_22, %c0_23] : memref<3x16x128xf32, #tpu.memory_space<vmem>>, vector<1x16x128xf32>
    %125 = vector.shape_cast %124 : vector<1x16x128xf32> to vector<16x128xf32>
    %126 = vector.shape_cast %123 : vector<16x128xf32> to vector<1x16x128xf32>
    tpu.vector_store %arg3[%c2_21, %c0_22, %c0_23], %126 {strides = array<i32>} : memref<3x16x128xf32, #tpu.memory_space<vmem>>, vector<1x16x128xf32>,
    return
  }
  func.func @transform_0(%arg0: i32, %arg1: memref<9xf32, #tpu.memory_space<smem>>) -> (i32, i32, i32) {
    %c0_i32 = arith.constant 0 : i32
    %c0_i32_0 = arith.constant 0 : i32
    %c0_i32_1 = arith.constant 0 : i32
    return %c0_i32, %arg0, %c0_i32_0 : i32, i32, i32
  }
  func.func @transform_1(%arg0: i32, %arg1: memref<9xf32, #tpu.memory_space<smem>>) -> (i32, i32, i32) {
    %c0_i32 = arith.constant 0 : i32
    %c0_i32_0 = arith.constant 0 : i32
    %c0_i32_1 = arith.constant 0 : i32
    return %c0_i32, %arg0, %c0_i32_0 : i32, i32, i32
  }
}

</mosaic_0001>

<bundles_post_ra>
// kernel: tpu_custom_call.1
= control target key start
LH: loop header
LB: loop body
LE: loop exit
PB: predicated region body
PF: predicated region fallthrough
CT: control target
= control target key end

     0   :  { %s2706_s0 = inlined_call_operand.hbm [shape: f32[9], index: 0, kind: input, shape index: {}]   ;;  %s2707_s1 = inlined_call_operand.hbm [shape: f32[3,32,128], index: 1, kind: output, shape index: {0}]   ;;  %s2708_s2 = inlined_call_operand.hbm [shape: f32[3,32,128], index: 2, kind: output, shape index: {1}]  }
   0x1   :  { %s1860_s11 = scalar_lea.hbm %s2706_s0, 16 }
   0x2   :  { %p1861_p0 = scmp.ne.s32.totalorder %s2706_s0, %s1860_s11  ;;  %p1864_p1 = scmp.lt.u32.totalorder %s1860_s11, %s2706_s0 }
   0x4   :  { %p1866_p2 = pnand %p1864_p1, %p1861_p0 }
   0x6   :  { %1869 = shalt.err (!%p1866_p2)  }
   0x7   :  { %s1904_s16 = smov [#allocation3]  }
   0x8   :  { %9 = dma.hbm_to_smem %s2706_s0, 16, %s1904_s16, [#allocation2] }
   0x9   :  { %1882 = dma.done.wait [#allocation2], 16 }
   0xa   :  { %1883 = vsyncadd [#allocation2], 4294967280 }
   0xb   :  { %11 = sfence }
   0xc   :  { %12 = vsyncpa [#allocation5], 0 }
   0xd   :  { %14 = vsyncpa [#allocation5 + $0x1], 0 }
   0xe   :  { %15 = vsyncpa [#allocation7], 0 }
   0xf   :  { %17 = vsyncpa [#allocation7 + $0x1], 0  ;;  %s1952_s19 = smov 0   ;;  %s1954_s20 = smov 0  }
  0x10   :  { %s1956_s21 = smov 0  }
  0x11 LB: > { %s1657_s0 = sadd.s32 4294967295, %s1902_s21   ;;  %s1969_s22 = sadd.s32 1, %s1902_s21   ;;  %s1902_s21 = sphi %s1956_s21, %s2719_s21   ;;  %s1898_s20 = sphi %s1954_s20, %s2718_s20   ;;  %s1894_s19 = sphi %s1952_s19, %s2717_s19  }
  0x12   : > { %s26_s23 = ssub.s32 %s1902_s21, %s1969_s22  ;;  %s29_s24 = sadd.s32 1, %s1898_s20 }
  0x13   : > { %p27_p3 = scmp.eq.s32.totalorder %s26_s23, 0  ;;  %p1658_p4 = scmp.ne.s32.totalorder %s26_s23, 0 }
  0x14   : > { %p33_p5 = scmp.eq.s32.totalorder %s1902_s21, 1  ;;  %p38_p6 = scmp.ne.s32.totalorder %s1898_s20, %s1894_s19 }
  0x15   : > { %s1978_s25 = scalar_select %p27_p3, %s1898_s20, %s29_s24  }
  0x16   : > { %p1980_p7 = por %p1658_p4, %p33_p5  ;;  %p39_p8 = scmp.eq.s32.totalorder %s1657_s0, 1 }
  0x17   : > { %p1660_p10 = scmp.ge.s32.totalorder %s1902_s21, 2 }
  0x18   : > { %p1984_p9 = por %p39_p8, %p38_p6  ;;  %v84_v0 = vlaneseq (!%p1660_p10)  ;;  %s1661_s28 = sshll.u32 (!%p1660_p10), %s1902_s21, 4  ;;  %v1905_v63 = vmov (!%p1660_p10), 683565275  }
  0x19   : > { %67 = sbr.rel (%p1660_p10) target bundleno = 312 (0x138), region = 12  ;;  %v88_v1 = vstv (!%p1660_p10), %s1661_s28  ;;  %s123_s29 = sld [smem:[#allocation3]] (!%p1660_p10) }
  0x1a   : > { %v85_v2 = vshrl.u32 (!%p1660_p10), %v84_v0, 7  ;;  %v92_v3 = vand.u32 (!%p1660_p10), 127, %v84_v0  ;;  %s1680_s30 = sld [smem:[#allocation3 + $0x1]] (!%p1660_p10)  ;;  %s1703_s3 = sld [smem:[#allocation3 + $0x2]] (!%p1660_p10) }
  0x1b   : > { %s1662_s4 = sld [smem:[#allocation3 + $0x3]] (!%p1660_p10)  ;;  %s1663_s5 = sld [smem:[#allocation3 + $0x6]] (!%p1660_p10) }
  0x1c   : > { %v86_v4 = vadd.s32 (!%p1660_p10), 8, %v85_v2  ;;  %v89_v5 = vadd.s32 (!%p1660_p10), %v88_v1, %v85_v2  ;;  %v99_v6 = vcvt.s32.f32 (!%p1660_p10), %v92_v3  ;;  %v1907_v3 = vmov (!%p1660_p10), 2131351028   ;;  %s2314_s6 = sand.u32 (!%p1660_p10), 1, %s1898_s20   ;;  %s1681_s10 = sld [smem:[#allocation3 + $0x4]] (!%p1660_p10) }
  0x1d   : > { %s1734_s7 = smul.u32 (!%p1660_p10), 48, %s2314_s6  ;;  %s1682_s11 = sld [smem:[#allocation3 + $0x7]] (!%p1660_p10) }
  0x1e   : > { %v90_v7 = vadd.s32 (!%p1660_p10), %v88_v1, %v86_v4  ;;  %v93_v8 = vcvt.s32.f32 (!%p1660_p10), %v89_v5  ;;  %v100_v9 = vmul.f32 (!%p1660_p10), 8.258065e-06, %v99_v6  ;;  %v1906_v1 = vmov (!%p1660_p10), 2475754826   ;;  %s2618_s12 = sld [smem:[#allocation3 + $0x5]] (!%p1660_p10)  ;;  %s1705_s13 = sld [smem:[#allocation3 + $0x8]] (!%p1660_p10) }
  0x1f   : > { %v1996_v30 = vstv (!%p1660_p10), %s123_s29  ;;  %v1908_v5 = vmov (!%p1660_p10), 2102212464   ;;  %s2363_s8 = scalar_lea.vmem (!%p1660_p10), [#allocation4], %s1734_s7  ;;  %s2368_s9 = scalar_lea.vmem (!%p1660_p10), [#allocation6], %s1734_s7 }
  0x20   : > { %v94_v10 = vcvt.s32.f32 %v90_v7  ;;  %v95_v11 = vmul.f32 8.258065e-06, %v93_v8  ;;  %v101_v12 = vadd.f32 -0.000128, %v100_v9  ;;  %v2000_v33 = vstv %s1680_s30  ;;  %s1490_s14 = scalar_lea.sflag [#allocation5], %s2314_s6  ;;  %s1495_s15 = scalar_lea.sflag [#allocation7], %s2314_s6 }
  0x21   : > { %v1909_v7 = vmov 920167782  }
  0x22   : > { %v96_v13 = vmul.f32 8.258065e-06, %v94_v10  ;;  %v97_v14 = vadd.f32 -0.000128, %v95_v11  ;;  %v104_v15 = vmul.f32 %v101_v12, %v101_v12 }
  0x24   : > { %v98_v16 = vadd.f32 -0.000128, %v96_v13  ;;  %v102_v17 = vmul.f32 %v97_v14, %v97_v14  ;;  %v1910_v14 = vmov 1326507024  }
  0x26   : > { %v103_v18 = vmul.f32 %v98_v16, %v98_v16  ;;  %v105_v19 = vadd.f32 %v104_v15, %v102_v17 }
  0x28   : > { %v106_v20 = vadd.f32 %v104_v15, %v103_v18  ;;  %v107_v21 = vadd.f32 0.0004, %v105_v19 }
  0x2a   : > { %v108_v22 = vadd.f32 0.0004, %v106_v20  ;;  %1828 = vrsqrt.f32 %v107_v21 }
  0x2c   : > { %1830 = vrsqrt.f32 %v108_v22 }
  0x34   : > { %v1990_v23 = vpop.eup %1828 }
  0x35   : > { %v111_v24 = vmul.f32 %v1990_v23, %v107_v21 }
  0x36   : > { %v1993_v25 = vpop.eup %1830 }
  0x37   : > { %v112_v26 = vmul.f32 %v1993_v25, %v108_v22  ;;  %v113_v27 = vadd.f32 0.02, %v111_v24 }
  0x39   : > { %v114_v28 = vadd.f32 0.02, %v112_v26  ;;  %1832 = vrcp.f32 %v113_v27 }
  0x3b   : > { %1834 = vrcp.f32 %v114_v28 }
  0x43   : > { %v1833_v29 = vpop.eup %1832 }
  0x44   : > { %v1998_v31 = vmul.f32 %v1833_v29, %v105_v19 }
  0x45   : > { %v1835_v32 = vpop.eup %1834 }
  0x46   : > { %v2002_v34 = vmul.f32 %v1835_v32, %v106_v20  ;;  %v2006_v35 = vmul.f32 %v1996_v30, %v1998_v31  ;;  %v2016_v39 = vmul.f32 %v2000_v33, %v1998_v31 }
  0x48   : > { %v2010_v36 = vmul.f32 %v1996_v30, %v2002_v34  ;;  %v129_v37 = vand.u32 2147483647, %v2006_v35  ;;  %v132_v38 = vand.u32 2139095040, %v2006_v35  ;;  %v586_v45 = vand.u32 2139095040, %v2016_v39 }
  0x49   : > { %v2027_v57 = vmul.f32 %v2000_v33, %v2002_v34  ;;  %v583_v58 = vand.u32 2147483647, %v2016_v39  ;;  %vm131_vm13 = vcmp.lt.s32.totalorder %v2006_v35, 0 }
  0x4a   : > { %v133_v40 = vshrl.u32 %v132_v38, 23  ;;  %v136_v41 = vand.u32 8388607, %v129_v37  ;;  %v232_v42 = vand.u32 2147483647, %v2010_v36  ;;  %v235_v43 = vand.u32 2139095040, %v2010_v36 }
  0x4b   : > { %v587_v52 = vshrl.u32 %v586_v45, 23  ;;  %vm2168_vm14 = vcmp.le.f32.partialorder %v129_v37, 0.7853982  ;;  %vm234_vm15 = vcmp.lt.s32.totalorder %v2010_v36, 0 }
  0x4c   : > { %v1664_v44 = vadd.s32 4294967169, %v133_v40  ;;  %v236_v46 = vshrl.u32 %v235_v43, 23  ;;  %v239_v47 = vand.u32 8388607, %v232_v42  ;;  %v137_v49 = vor.u32 8388608, %v136_v41 }
  0x4d   : > { %v2034_v61 = vadd.s32 4294967169, %v587_v52 }
  0x4e   : > { %v139_v48 = vadd.s32 1, %v1664_v44  ;;  %v1668_v50 = vadd.s32 4294967169, %v236_v46  ;;  %v240_v51 = vor.u32 8388608, %v239_v47  ;;  %v2030_v59 = vshll.u32 %v137_v49, 8 }
  0x50   : > { %vm140_vm0 = vcmp.gt.s32.totalorder %v139_v48, 0  ;;  %v242_v54 = vadd.s32 1, %v1668_v50  ;;  %v2032_v60 = vshll.u32 %v240_v51, 8 }
  0x51   : > { %v141_v53 = vsel %vm140_vm0, %v139_v48, 0 }
  0x52   : > { %v142_v55 = vshrl.u32 %v141_v53, 5  ;;  %v143_v56 = vand.u32 31, %v141_v53  ;;  %vm243_vm1 = vcmp.gt.s32.totalorder %v242_v54, 0 }
  0x53   : > { %v244_v19 = vsel %vm243_vm1, %v242_v54, 0 }
  0x54   : > { %v144_v62 = vsub.s32 32, %v143_v56  ;;  %v146_v0 = vshll.u32 %v1905_v63, %v143_v56  ;;  %v149_v2 = vshll.u32 %v1906_v1, %v143_v56  ;;  %v152_v4 = vshll.u32 %v1907_v3, %v143_v56 }
  0x55   : > { %v155_v6 = vshll.u32 %v1908_v5, %v143_v56  ;;  %v158_v8 = vshll.u32 %v1909_v7, %v143_v56  ;;  %vm161_vm2 = vcmp.lt.s32.totalorder %v142_v55, 1  ;;  %vm162_vm3 = vcmp.lt.s32.totalorder %v142_v55, 2 }
  0x56   : > { %v145_v9 = vshrl.u32 %v1905_v63, %v144_v62  ;;  %v147_v10 = vshrl.u32 %v1906_v1, %v144_v62  ;;  %v150_v11 = vshrl.u32 %v1907_v3, %v144_v62  ;;  %v153_v12 = vshrl.u32 %v1908_v5, %v144_v62 }
  0x57   : > { %v156_v13 = vshrl.u32 %v1909_v7, %v144_v62  ;;  %v159_v15 = vshrl.u32 %v1910_v14, %v144_v62  ;;  %vm163_vm4 = vcmp.lt.s32.totalorder %v142_v55, 3  ;;  %vm164_vm5 = vcmp.lt.s32.totalorder %v142_v55, 4 }
  0x58   : > { %v148_v16 = vor.u32 %v147_v10, %v146_v0  ;;  %v151_v17 = vor.u32 %v150_v11, %v149_v2  ;;  %v154_v18 = vor.u32 %v153_v12, %v152_v4  ;;  %v2048_v22 = vshrl.u32 %v244_v19, 5 }
  0x59   : > { %v157_v20 = vor.u32 %v156_v13, %v155_v6  ;;  %v160_v21 = vor.u32 %v159_v15, %v158_v8  ;;  %v246_v24 = vand.u32 31, %v244_v19  ;;  %v593_v13 = vadd.s32 1, %v2034_v61 }
  0x5a   : > { %v165_v26 = vsel %vm161_vm2, %v145_v9, %v148_v16  ;;  %v166_v27 = vsel %vm164_vm5, %v154_v18, 2102212464  ;;  %v169_v28 = vsel %vm161_vm2, %v148_v16, %v151_v17  ;;  %v173_v29 = vsel %vm161_vm2, %v151_v17, %v154_v18 }
  0x5b   : > { %v167_v32 = vsel %vm163_vm4, %v151_v17, %v166_v27  ;;  %v170_v38 = vsel %vm164_vm5, %v157_v20, 920167782  ;;  %v174_v40 = vsel %vm164_vm5, %v160_v21, 1326507024  ;;  %v247_v41 = vsub.s32 32, %v246_v24 }
  0x5c   : > { %v168_v43 = vsel %vm162_vm3, %v165_v26, %v167_v32  ;;  %v171_v44 = vsel %vm163_vm4, %v154_v18, %v170_v38  ;;  %v175_v45 = vsel %vm163_vm4, %v157_v20, %v174_v40  ;;  %v249_v46 = vshll.u32 %v1905_v63, %v246_v24 }
  0x5d   : > { %v172_v47 = vsel %vm162_vm3, %v169_v28, %v171_v44  ;;  %v176_v48 = vsel %vm162_vm3, %v173_v29, %v175_v45  ;;  %v184_v49 = vmul.u32 %v2030_v59, %v168_v43  ;;  %v248_v50 = vshrl.u32 %v1905_v63, %v247_v41 }
  0x5e   : > { %v2063_v51 = vmul.u32.u64.low %v2030_v59, %v176_v48  ;;  %v2064_v52 = vmul.u32.u64.high %v2030_v59, %v176_v48, %v2063_v51  ;;  %v2067_v53 = vmul.u32.u64.low %v2030_v59, %v172_v47  ;;  %v2068_v54 = vmul.u32.u64.high %v2030_v59, %v172_v47, %v2067_v53 }
  0x5f   : > { %v250_v56 = vshrl.u32 %v1906_v1, %v247_v41  ;;  %v252_v62 = vshll.u32 %v1906_v1, %v246_v24  ;;  %v253_v55 = vshrl.u32 %v1907_v3, %v247_v41  ;;  %v255_v0 = vshll.u32 %v1907_v3, %v246_v24 }
  0x60   : > { %v256_v2 = vshrl.u32 %v1908_v5, %v247_v41  ;;  %v258_v4 = vshll.u32 %v1908_v5, %v246_v24  ;;  %v259_v6 = vshrl.u32 %v1909_v7, %v247_v41  ;;  %v261_v8 = vshll.u32 %v1909_v7, %v246_v24 }
  0x61   : > { %v251_v9 = vor.u32 %v250_v56, %v249_v46  ;;  %v254_v59 = vor.u32 %v253_v55, %v252_v62  ;;  %v262_v10 = vshrl.u32 %v1910_v14, %v247_v41  ;;  %vm264_vm6 = vcmp.lt.s32.totalorder %v2048_v22, 1 }
  0x62   : > { %vm186_vm7 = vc.u32 %v2064_v52, %v2067_v53  ;;  %v187_v11 = vadd.s32 1, %v2068_v54  ;;  %v257_v12 = vor.u32 %v256_v2, %v255_v0  ;;  %v260_v15 = vor.u32 %v259_v6, %v258_v4 }
  0x63   : > { %v263_v16 = vor.u32 %v262_v10, %v261_v8  ;;  %vm265_vm8 = vcmp.lt.s32.totalorder %v2048_v22, 2  ;;  %vm266_vm9 = vcmp.lt.s32.totalorder %v2048_v22, 3  ;;  %vm267_vm10 = vcmp.lt.s32.totalorder %v2048_v22, 4 }
  0x64   : > { %v188_v17 = vsel %vm186_vm7, %v187_v11, %v2068_v54  ;;  %v268_v18 = vsel %vm264_vm6, %v248_v50, %v251_v9  ;;  %v272_v19 = vsel %vm264_vm6, %v251_v9, %v254_v59  ;;  %v269_v21 = vsel %vm267_vm10, %v257_v12, 2102212464 }
  0x65   : > { %v189_v20 = vadd.s32 %v188_v17, %v184_v49  ;;  %v273_v61 = vsel %vm267_vm10, %v260_v15, 920167782  ;;  %v276_v24 = vsel %vm264_vm6, %v254_v59, %v257_v12  ;;  %v270_v26 = vsel %vm266_vm9, %v254_v59, %v269_v21 }
  0x66   : > { %v274_v27 = vsel %vm266_vm9, %v257_v12, %v273_v61  ;;  %v277_v28 = vsel %vm267_vm10, %v263_v16, 1326507024  ;;  %vm594_vm11 = vcmp.gt.s32.totalorder %v593_v13, 0  ;;  %v590_v40 = vand.u32 8388607, %v583_v58 }
  0x67   : > { %v190_v29 = vadd.s32 536870912, %v189_v20  ;;  %v275_v32 = vsel %vm265_vm8, %v272_v19, %v274_v27  ;;  %v278_v38 = vsel %vm266_vm9, %v260_v15, %v277_v28  ;;  %v271_v41 = vsel %vm265_vm8, %v268_v18, %v270_v26 }
  0x68   : > { %v279_v43 = vsel %vm265_vm8, %v276_v24, %v278_v38  ;;  %v2110_v44 = vmul.u32.u64.low %v2032_v60, %v275_v32  ;;  %v2111_v45 = vmul.u32.u64.high %v2032_v60, %v275_v32, %v2110_v44  ;;  %v595_v49 = vsel %vm594_vm11, %v593_v13, 0 }
  0x69   : > { %v191_v46 = vshrl.u32 %v190_v29, 30  ;;  %v2115_v47 = vmul.u32.u64.low %v2032_v60, %v279_v43  ;;  %v2116_v48 = vmul.u32.u64.high %v2032_v60, %v279_v43, %v2115_v47  ;;  %v597_v50 = vand.u32 31, %v595_v49 }
  0x6a   : > { %v287_v54 = vmul.u32 %v2032_v60, %v271_v41  ;;  %v119_v56 = vmul.f32 %v1990_v23, %v1990_v23  ;;  %v290_v22 = vadd.s32 1, %v2111_v45  ;;  %v591_v62 = vor.u32 8388608, %v590_v40 }
  0x6b   : > { %v192_v51 = vshll.u32 %v191_v46, 30  ;;  %v2122_v55 = vstv %s1703_s3  ;;  %vm289_vm12 = vc.u32 %v2116_v48, %v2110_v44  ;;  %v686_v2 = vand.u32 2147483647, %v2027_v57 }
  0x6c   : > { %v689_v4 = vand.u32 2139095040, %v2027_v57  ;;  %v291_v6 = vsel %vm289_vm12, %v290_v22, %v2111_v45  ;;  %v2131_v60 = vstv %s1662_s4  ;;  %v598_v8 = vsub.s32 32, %v597_v50 }
  0x6d   : > { %v2124_v0 = vsub.s32 %v189_v20, %v192_v51  ;;  %v2135_v9 = vmul.f32 %v1993_v25, %v1993_v25  ;;  %v292_v10 = vadd.s32 %v291_v6, %v287_v54  ;;  %v2138_v11 = vstv %s1663_s5 }
  0x6e   : > { %v2140_v12 = vmul.f32 2.0371832e-13, %v119_v56  ;;  %v2143_v13 = vshll.u32 %v591_v62, 8  ;;  %v2147_v15 = vmul.f32 %v2122_v55, %v1998_v31  ;;  %v215_v17 = vsub.s32 4, %v191_v46 }
  0x6f   : > { %v195_v59 = vsub.s32 0, %v2124_v0  ;;  %v690_v18 = vshrl.u32 %v689_v4, 23  ;;  %v2152_v19 = vand.u32 8388607, %v686_v2  ;;  %v293_v20 = vadd.s32 536870912, %v292_v10 }
  0x70   : > { %v600_v21 = vshll.u32 %v1905_v63, %v597_v50  ;;  %v601_v61 = vshrl.u32 %v1906_v1, %v598_v8  ;;  %v603_v24 = vshll.u32 %v1906_v1, %v597_v50  ;;  %v604_v27 = vshrl.u32 %v1907_v3, %v598_v8 }
  0x71   : > { %v1665_v16 = vmin.u32 %v195_v59, %v2124_v0  ;;  %v606_v31 = vshll.u32 %v1907_v3, %v597_v50  ;;  %v607_v28 = vshrl.u32 %v1908_v5, %v598_v8  ;;  %v294_v29 = vshrl.u32 %v293_v20, 30 }
  0x72   : > { %v596_v32 = vshrl.u32 %v595_v49, 5  ;;  %v609_v38 = vshll.u32 %v1908_v5, %v597_v50  ;;  %v610_v40 = vshrl.u32 %v1909_v7, %v598_v8  ;;  %v185_v41 = vadd.s32 %v2067_v53, %v2064_v52 }
  0x73   : > { %v197_v26 = vclz %v1665_v16  ;;  %v216_v45 = vsel %vm131_vm13, %v215_v17, %v191_v46  ;;  %v1687_v47 = vadd.s32 4294967169, %v690_v18  ;;  %v295_v49 = vshll.u32 %v294_v29, 30 }
  0x74   : > { %v599_v54 = vshrl.u32 %v1905_v63, %v598_v8  ;;  %v612_v56 = vshll.u32 %v1909_v7, %v597_v50  ;;  %v613_v52 = vshrl.u32 %v1910_v14, %v598_v8  ;;  %v602_v53 = vor.u32 %v601_v61, %v600_v21 }
  0x75   : > { %v1666_v43 = vadd.s32 4294967294, %v197_v26  ;;  %v605_v22 = vor.u32 %v604_v27, %v603_v24  ;;  %v608_v46 = vor.u32 %v607_v28, %v606_v31  ;;  %v2176_v4 = vsub.s32 %v292_v10, %v295_v49 }
  0x76   : > { %v611_v37 = vor.u32 %v610_v40, %v609_v38  ;;  %vm618_vm1 = vcmp.lt.s32.totalorder %v596_v32, 4  ;;  %vm2182_vm2 = vcmp.le.f32.partialorder %v232_v42, 0.7853982  ;;  %v288_v8 = vadd.s32 %v2110_v44, %v2116_v48 }
  0x77   : > { %vm1667_vm0 = vcmp.lt.s32.totalorder %v1666_v43, 0  ;;  %v620_v17 = vsel %vm618_vm1, %v608_v46, 2102212464  ;;  %v298_v10 = vsub.s32 0, %v2176_v4  ;;  %v614_v18 = vor.u32 %v613_v52, %v612_v56 }
  0x78   : > { %v200_v62 = vsel %vm1667_vm0, 0, %v1666_v43  ;;  %vm615_vm3 = vcmp.lt.s32.totalorder %v596_v32, 1  ;;  %v318_v61 = vsub.s32 4, %v294_v29  ;;  %vm617_vm4 = vcmp.lt.s32.totalorder %v596_v32, 3 }
  0x79   : > { %v201_v6 = vsub.s32 32, %v200_v62  ;;  %v202_v59 = vshll.u32 %v2124_v0, %v200_v62  ;;  %v205_v16 = vsub.s32 4294967266, %v200_v62  ;;  %v1669_v0 = vmin.u32 %v298_v10, %v2176_v4 }
  0x7a   : > { %vm616_vm5 = vcmp.lt.s32.totalorder %v596_v32, 2  ;;  %v619_v24 = vsel %vm615_vm3, %v599_v54, %v602_v53  ;;  %v621_v42 = vsel %vm617_vm4, %v605_v22, %v620_v17  ;;  %v623_v31 = vsel %vm615_vm3, %v602_v53, %v605_v22 }
  0x7b   : > { %v203_v20 = vshrl.u32 %v185_v41, %v201_v6  ;;  %v206_v21 = vadd.s32 127, %v205_v16  ;;  %v624_v28 = vsel %vm618_vm1, %v611_v37, 920167782  ;;  %v300_v44 = vclz %v1669_v0 }
  0x7c   : > { %v625_v48 = vsel %vm617_vm4, %v608_v46, %v624_v28  ;;  %v627_v38 = vsel %vm615_vm3, %v605_v22, %v608_v46  ;;  %v628_v40 = vsel %vm618_vm1, %v614_v18, 1326507024  ;;  %v218_v49 = vsel %vm2168_vm14, 0, %v216_v45 }
  0x7d   : > { %v204_v26 = vor.u32 %v203_v20, %v202_v59  ;;  %v207_v27 = vshll.u32 %v206_v21, 23  ;;  %v319_v54 = vsel %vm234_vm15, %v318_v61, %v294_v29  ;;  %v1670_v56 = vadd.s32 4294967294, %v300_v44 }
  0x7e   : > { %v622_v52 = vsel %vm616_vm5, %v619_v24, %v621_v42  ;;  %v626_v53 = vsel %vm616_vm5, %v623_v31, %v625_v48  ;;  %v629_v62 = vsel %vm617_vm4, %v611_v37, %v628_v40  ;;  %v428_v45 = vadd.s32 3, %v218_v49 }
  0x7f   : > { %v208_v41 = vor.u32 4788187, %v207_v27  ;;  %v211_v43 = vcvt.s32.f32 %v204_v26  ;;  %v630_v22 = vsel %vm616_vm5, %v627_v38, %v629_v62  ;;  %vm1671_vm6 = vcmp.lt.s32.totalorder %v1670_v56, 0 }
  0x80   : > { %v2203_v46 = vmul.u32.u64.low %v2143_v13, %v626_v53  ;;  %v2204_v59 = vmul.u32.u64.high %v2143_v13, %v626_v53, %v2203_v46  ;;  %v2208_v16 = vmul.u32.u64.low %v2143_v13, %v630_v22  ;;  %v2209_v29 = vmul.u32.u64.high %v2143_v13, %v630_v22, %v2208_v16 }
  0x81   : > { %v209_v6 = vand.u32 2147483647, %v208_v41  ;;  %v303_v10 = vsel %vm1671_vm6, 0, %v1670_v56  ;;  %v321_v18 = vsel %vm2182_vm2, 0, %v319_v54  ;;  %v696_v37 = vadd.s32 1, %v1687_v47 }
  0x82   : > { %v304_v20 = vsub.s32 32, %v303_v10  ;;  %v305_v32 = vshll.u32 %v2176_v4, %v303_v10  ;;  %v308_v21 = vsub.s32 4294967266, %v303_v10  ;;  %v638_v61 = vmul.u32 %v2143_v13, %v622_v52 }
  0x83   : > { %v212_v17 = vmul.f32 %v211_v43, %v209_v6  ;;  %v2215_v24 = vand.u32 3, %v218_v49  ;;  %v641_v42 = vadd.s32 1, %v2204_v59  ;;  %vm697_vm7 = vcmp.gt.s32.totalorder %v696_v37, 0 }
  0x84   : > { %v306_v26 = vshrl.u32 %v288_v8, %v304_v20  ;;  %v309_v27 = vadd.s32 127, %v308_v21  ;;  %v2218_v31 = vand.u32 3, %v428_v45  ;;  %vm640_vm8 = vc.u32 %v2209_v29, %v2203_v46 }
  0x85   : > { %v213_v0 = vxor.u32 2147483648, %v212_v17  ;;  %v532_v4 = vadd.s32 3, %v321_v18  ;;  %v642_v28 = vsel %vm640_vm8, %v641_v42, %v2204_v59  ;;  %v698_v13 = vsel %vm697_vm7, %v696_v37, 0 }
  0x86   : > { %v307_v48 = vor.u32 %v306_v26, %v305_v32  ;;  %v310_v38 = vshll.u32 %v309_v27, 23  ;;  %v643_v8 = vadd.s32 %v642_v28, %v638_v61  ;;  %vm585_vm9 = vcmp.lt.s32.totalorder %v2016_v39, 0 }
  0x87   : > { %v214_v47 = vsel %vm131_vm13, %v213_v0, %v212_v17  ;;  %v694_v40 = vor.u32 8388608, %v2152_v19  ;;  %v700_v41 = vand.u32 31, %v698_v13  ;;  %vm227_vm10 = vcmp.eq.s32.totalorder %v2215_v24, 2 }
  0x88   : > { %v217_v44 = vsel %vm2168_vm14, %v2006_v35, %v214_v47  ;;  %v311_v43 = vor.u32 4788187, %v310_v38  ;;  %v314_v49 = vcvt.s32.f32 %v307_v48  ;;  %v644_v54 = vadd.s32 536870912, %v643_v8 }
  0x89   : > { %1836 = vcosq.f32 %v217_v44  ;;  %v2231_v56 = vand.u32 3, %v321_v18  ;;  %vm434_vm11 = vcmp.eq.s32.totalorder %v2218_v31, 2  ;;  %v2234_v51 = vand.u32 3, %v532_v4 }
  0x8a   : > { %1838 = vsinq.f32 %v217_v44  ;;  %v701_v52 = vsub.s32 32, %v700_v41  ;;  %vm224_vm12 = vcmp.eq.s32.totalorder %v2215_v24, 0  ;;  %v312_v53 = vand.u32 2147483647, %v311_v43 }
  0x8b   : > { %vm431_vm13 = vcmp.eq.s32.totalorder %v2218_v31, 0  ;;  %v645_v19 = vshrl.u32 %v644_v54, 30  ;;  %v2238_v62 = vshrl.u32 %v698_v13, 5  ;;  %v703_v6 = vshll.u32 %v1905_v63, %v700_v41 }
  0x8c   : > { %vm223_vm14 = vcmp.lt.s32.totalorder %v2215_v24, 2  ;;  %vm430_vm0 = vcmp.lt.s32.totalorder %v2218_v31, 2  ;;  %v704_v22 = vshrl.u32 %v1906_v1, %v701_v52  ;;  %v706_v59 = vshll.u32 %v1906_v1, %v700_v41 }
  0x8d   : > { %v707_v45 = vshrl.u32 %v1907_v3, %v701_v52  ;;  %v709_v16 = vshll.u32 %v1907_v3, %v700_v41  ;;  %vm221_vm1 = vweird.f32 %v2006_v35  ;;  %v315_v17 = vmul.f32 %v314_v49, %v312_v53 }
  0x8e   : > { %v646_v10 = vshll.u32 %v645_v19, 30  ;;  %v669_v18 = vsub.s32 4, %v645_v19  ;;  %v710_v37 = vshrl.u32 %v1908_v5, %v701_v52  ;;  %v712_v20 = vshll.u32 %v1908_v5, %v700_v41 }
  0x8f   : > { %v713_v32 = vshrl.u32 %v1909_v7, %v701_v52  ;;  %v715_v21 = vshll.u32 %v1909_v7, %v700_v41  ;;  %v716_v61 = vshrl.u32 %v1910_v14, %v701_v52  ;;  %v316_v0 = vxor.u32 2147483648, %v315_v17 }
  0x90   : > { %v2255_v42 = vadd.s32 %v2203_v46, %v2209_v29  ;;  %v2257_v26 = vsub.s32 %v643_v8, %v646_v10  ;;  %v2259_v27 = vshll.u32 %v694_v40, 8  ;;  %v702_v47 = vshrl.u32 %v1905_v63, %v701_v52 }
  0x91   : > { %v705_v4 = vor.u32 %v704_v22, %v703_v6  ;;  %v708_v28 = vor.u32 %v707_v45, %v706_v59  ;;  %v1042_v13 = vand.u32 2139095040, %v2147_v15  ;;  %v317_v44 = vsel %vm234_vm15, %v316_v0, %v315_v17 }
  0x92   : > { %v649_v48 = vsub.s32 0, %v2257_v26  ;;  %v2268_v38 = vsel %vm585_vm9, %v669_v18, %v645_v19  ;;  %v711_v46 = vor.u32 %v710_v37, %v709_v16  ;;  %v320_v8 = vsel %vm2182_vm2, %v2010_v36, %v317_v44 }
  0x93   : > { %v1837_v29 = vpop.eup %1836  ;;  %v714_v40 = vor.u32 %v713_v32, %v712_v20  ;;  %v717_v41 = vor.u32 %v716_v61, %v715_v21  ;;  %vm718_vm3 = vcmp.lt.s32.totalorder %v2238_v62, 1  ;;  %1840 = vcosq.f32 %v320_v8 }
  0x94   : > { %v1839_v43 = vpop.eup %1838  ;;  %v228_v49 = vxor.u32 2147483648, %v1837_v29  ;;  %v1684_v54 = vmin.u32 %v649_v48, %v2257_v26  ;;  %vm721_vm15 = vcmp.lt.s32.totalorder %v2238_v62, 4  ;;  %1842 = vsinq.f32 %v320_v8 }
  0x95   : > { %v225_v52 = vxor.u32 2147483648, %v1839_v43  ;;  %vm719_vm4 = vcmp.lt.s32.totalorder %v2238_v62, 2  ;;  %vm720_vm5 = vcmp.lt.s32.totalorder %v2238_v62, 3  ;;  %vm330_vm2 = vcmp.eq.s32.totalorder %v2231_v56, 2 }
  0x96   : > { %v229_v50 = vsel %vm227_vm10, %v228_v49, %v1839_v43  ;;  %v436_v53 = vsel %vm434_vm11, %v228_v49, %v1839_v43  ;;  %vm538_vm6 = vcmp.eq.s32.totalorder %v2234_v51, 2  ;;  %v651_v19 = vclz %v1684_v54 }
  0x97   : > { %v723_v6 = vsel %vm721_vm15, %v711_v46, 2102212464  ;;  %v226_v22 = vsel %vm224_vm12, %v1837_v29, %v225_v52  ;;  %vm327_vm7 = vcmp.eq.s32.totalorder %v2231_v56, 0  ;;  %v433_v59 = vsel %vm431_vm13, %v1837_v29, %v225_v52 }
  0x98   : > { %vm535_vm8 = vcmp.eq.s32.totalorder %v2234_v51, 0  ;;  %v722_v45 = vsel %vm718_vm3, %v702_v47, %v705_v4  ;;  %v727_v16 = vsel %vm721_vm15, %v714_v40, 920167782  ;;  %v230_v17 = vsel %vm223_vm14, %v226_v22, %v229_v50 }
  0x99   : > { %vm326_vm10 = vcmp.lt.s32.totalorder %v2231_v56, 2  ;;  %v437_v10 = vsel %vm430_vm0, %v433_v59, %v436_v53  ;;  %vm534_vm11 = vcmp.lt.s32.totalorder %v2234_v51, 2  ;;  %v1685_v18 = vadd.s32 4294967294, %v651_v19 }
  0x9a   : > { %v724_v37 = vsel %vm720_vm5, %v708_v28, %v723_v6  ;;  %v231_v20 = vsel %vm221_vm1, nan, %v230_v17  ;;  %vm324_vm12 = vweird.f32 %v2010_v36  ;;  %v438_v24 = vsel %vm221_vm1, nan, %v437_v10 }
  0x9b   : > { %v726_v32 = vsel %vm718_vm3, %v705_v4, %v708_v28  ;;  %v728_v31 = vsel %vm720_vm5, %v711_v46, %v727_v16  ;;  %v544_v21 = vmul.f32 %v2131_v60, %v231_v20  ;;  %v547_v61 = vmul.f32 %v2138_v11, %v438_v24 }
  0x9c   : > { %v551_v0 = vmul.f32 %v2138_v11, %v231_v20  ;;  %v553_v47 = vmul.f32 %v2131_v60, %v438_v24  ;;  %vm1686_vm13 = vcmp.lt.s32.totalorder %v1685_v18, 0  ;;  %v2322_v35 = vsel %vm719_vm4, %v722_v45, %v724_v37 }
  0x9d   : > { %v730_v4 = vsel %vm718_vm3, %v708_v28, %v711_v46  ;;  %v731_v44 = vsel %vm721_vm15, %v717_v41, 1326507024  ;;  %v549_v48 = vsub.f32 %v544_v21, %v547_v61  ;;  %v654_v8 = vsel %vm1686_vm13, 0, %v1685_v18  ;;  %v1841_v53 = vpop.eup %1840 }
  0x9e   : > { %v555_v29 = vadd.f32 %v553_v47, %v551_v0  ;;  %v732_v43 = vsel %vm720_vm5, %v714_v40, %v731_v44  ;;  %v655_v49 = vsub.s32 32, %v654_v8  ;;  %v656_v54 = vshll.u32 %v2257_v26, %v654_v8  ;;  %v1843_v6 = vpop.eup %1842 }
  0x9f   : > { %v659_v52 = vsub.s32 4294967266, %v654_v8  ;;  %v729_v50 = vsel %vm719_vm4, %v726_v32, %v728_v31  ;;  %v557_v28 = vmul.f32 %v1990_v23, %v549_v48  ;;  %v569_v19 = vmul.f32 %v549_v48, %v1996_v30 }
  0xa0   : > { %v559_v46 = vmul.f32 %v555_v29, %v1996_v30  ;;  %v567_v41 = vmul.f32 %v1990_v23, %v555_v29  ;;  %v331_v22 = vxor.u32 2147483648, %v1841_v53  ;;  %v657_v40 = vshrl.u32 %v2255_v42, %v655_v49 }
  0xa1   : > { %v660_v59 = vadd.s32 127, %v659_v52  ;;  %v733_v26 = vsel %vm719_vm4, %v730_v4, %v732_v43  ;;  %v328_v45 = vxor.u32 2147483648, %v1843_v6  ;;  %v1043_v10 = vshrl.u32 %v1042_v13, 23 }
  0xa2   : > { %v561_v16 = vadd.f32 %v559_v46, %v557_v28  ;;  %v571_v17 = vsub.f32 %v567_v41, %v569_v19  ;;  %v332_v18 = vsel %vm330_vm2, %v331_v22, %v1843_v6  ;;  %v540_v37 = vsel %vm538_vm6, %v331_v22, %v1843_v6 }
  0xa3   : > { %v658_v20 = vor.u32 %v657_v40, %v656_v54  ;;  %v661_v42 = vshll.u32 %v660_v59, 23  ;;  %v329_v62 = vsel %vm327_vm7, %v1841_v53, %v328_v45  ;;  %v537_v24 = vsel %vm535_vm8, %v1841_v53, %v328_v45 }
  0xa4   : > { %v563_v32 = vmul.f32 %v561_v16, %v2140_v12  ;;  %v573_v31 = vmul.f32 %v571_v17, %v2140_v12  ;;  %v333_v13 = vsel %vm326_vm10, %v329_v62, %v332_v18  ;;  %v541_v21 = vsel %vm534_vm11, %v537_v24, %v540_v37 }
  0xa5   : > { %v662_v61 = vor.u32 4788187, %v661_v42  ;;  %v665_v0 = vcvt.s32.f32 %v658_v20  ;;  %v334_v47 = vsel %vm324_vm12, nan, %v333_v13  ;;  %v542_v4 = vsel %vm324_vm12, nan, %v541_v21 }
  0xa6   : > { %565 = vst [vmem:[%s2363_s8] sm:$0xff] %v563_v32  ;;  %575 = vst [vmem:[%s2368_s9] sm:$0xff] %v573_v31  ;;  %v2372_v56 = vmul.u32.u64.low %v2259_v27, %v733_v26  ;;  %v2373_v51 = vmul.u32.u64.high %v2259_v27, %v733_v26, %v2372_v56  ;;  %v545_v44 = vmul.f32 %v2131_v60, %v334_v47  ;;  %v548_v48 = vmul.f32 %v2138_v11, %v542_v4 }
  0xa7   : > { %v552_v36 = vmul.f32 %v2138_v11, %v334_v47  ;;  %v554_v29 = vmul.f32 %v2131_v60, %v542_v4  ;;  %v2380_v8 = vmul.f32 2.0371832e-13, %v2135_v9  ;;  %v663_v43 = vand.u32 2147483647, %v662_v61 }
  0xa8   : > { %v2383_v49 = vmul.u32.u64.low %v2259_v27, %v729_v50  ;;  %v2384_v54 = vmul.u32.u64.high %v2259_v27, %v729_v50, %v2383_v49  ;;  %v550_v52 = vsub.f32 %v545_v44, %v548_v48  ;;  %vm2388_vm14 = vcmp.le.f32.partialorder %v583_v58, 0.7853982 }
  0xa9   : > { %v556_v53 = vadd.f32 %v554_v29, %v552_v36  ;;  %v1706_v46 = vadd.s32 4294967169, %v1043_v10  ;;  %v666_v11 = vmul.f32 %v665_v0, %v663_v43  ;;  %v672_v60 = vsel %vm2388_vm14, 0, %v2268_v38 }
  0xaa   : > { %v741_v9 = vmul.u32 %v2259_v27, %v2322_v35  ;;  %vm743_vm0 = vc.u32 %v2373_v51, %v2383_v49  ;;  %v558_v50 = vmul.f32 %v1993_v25, %v550_v52  ;;  %v570_v19 = vmul.f32 %v550_v52, %v1996_v30 }
  0xab   : > { %v560_v41 = vmul.f32 %v556_v53, %v1996_v30  ;;  %v568_v58 = vmul.f32 %v1993_v25, %v556_v53  ;;  %v667_v6 = vxor.u32 2147483648, %v666_v11  ;;  %v744_v22 = vadd.s32 1, %v2384_v54 }
  0xac   : > { %v882_v27 = vadd.s32 3, %v672_v60  ;;  %v1049_v35 = vadd.s32 1, %v1706_v46  ;;  %v1039_v45 = vand.u32 2147483647, %v2147_v15  ;;  %v2412_v18 = vand.u32 3, %v672_v60 }
  0xad   : > { %v562_v38 = vadd.f32 %v560_v41, %v558_v50  ;;  %v572_v40 = vsub.f32 %v568_v58, %v570_v19  ;;  %v668_v59 = vsel %vm585_vm9, %v667_v6, %v666_v11  ;;  %v745_v26 = vsel %vm743_vm0, %v744_v22, %v2384_v54 }
  0xae   : > { %v671_v17 = vsel %vm2388_vm14, %v2016_v39, %v668_v59  ;;  %v746_v10 = vadd.s32 %v745_v26, %v741_v9  ;;  %vm1050_vm1 = vcmp.gt.s32.totalorder %v1049_v35, 0  ;;  %v883_v20 = vand.u32 3, %v882_v27 }
  0xaf   : > { %v564_v30 = vmul.f32 %v562_v38, %v2380_v8  ;;  %v574_v16 = vmul.f32 %v572_v40, %v2380_v8  ;;  %1844 = vcosq.f32 %v671_v17  ;;  %v1051_v42 = vsel %vm1050_vm1, %v1049_v35, 0 }
  0xb0   : > { %1846 = vsinq.f32 %v671_v17  ;;  %v747_v37 = vadd.s32 536870912, %v746_v10  ;;  %v1046_v62 = vand.u32 8388607, %v1039_v45  ;;  %v1053_v24 = vand.u32 31, %v1051_v42 }
  0xb1   : > { %566 = vst [vmem:[%s2363_s8 + $0x8] sm:$0xff] %v564_v30  ;;  %576 = vst [vmem:[%s2368_s9 + $0x8] sm:$0xff] %v574_v16  ;;  %v2420_v31 = vstv %s1681_s10  ;;  %v2422_v13 = vstv %s1682_s11  ;;  %v2426_v21 = vmul.f32 %v2122_v55, %v2002_v34  ;;  %vm677_vm9 = vcmp.lt.s32.totalorder %v2412_v18, 2 }
  0xb2   : > { %v2418_v32 = vshrl.u32 %v747_v37, 30  ;;  %vm678_vm3 = vcmp.eq.s32.totalorder %v2412_v18, 0  ;;  %vm681_vm15 = vcmp.eq.s32.totalorder %v2412_v18, 2  ;;  %v1054_v61 = vsub.s32 32, %v1053_v24 }
  0xb3   : > { %vm675_vm4 = vweird.f32 %v2016_v39  ;;  %v2433_v0 = vadd.s32 %v2383_v49, %v2373_v51  ;;  %vm884_vm5 = vcmp.lt.s32.totalorder %v883_v20, 2  ;;  %vm885_vm2 = vcmp.eq.s32.totalorder %v883_v20, 0 }
  0xb4   : > { %v749_v47 = vshll.u32 %v2418_v32, 30  ;;  %v1047_v4 = vor.u32 8388608, %v1046_v62  ;;  %v1056_v34 = vshll.u32 %v1905_v63, %v1053_v24  ;;  %v1059_v56 = vshll.u32 %v1906_v1, %v1053_v24 }
  0xb5   : > { %v1062_v44 = vshll.u32 %v1907_v3, %v1053_v24  ;;  %v1057_v36 = vshrl.u32 %v1906_v1, %v1054_v61  ;;  %v1060_v29 = vshrl.u32 %v1907_v3, %v1054_v61  ;;  %v1065_v51 = vshll.u32 %v1908_v5, %v1053_v24 }
  0xb6   : > { %v2439_v48 = vsub.s32 %v746_v10, %v749_v47  ;;  %v1063_v43 = vshrl.u32 %v1908_v5, %v1054_v61  ;;  %v1066_v49 = vshrl.u32 %v1909_v7, %v1054_v61  ;;  %v1068_v54 = vshll.u32 %v1909_v7, %v1053_v24 }
  0xb7   : > { %v1069_v52 = vshrl.u32 %v1910_v14, %v1054_v61  ;;  %vm888_vm6 = vcmp.eq.s32.totalorder %v883_v20, 2  ;;  %v2449_v28 = vshrl.u32 %v1051_v42, 5  ;;  %v1142_v46 = vand.u32 2147483647, %v2426_v21 }
  0xb8   : > { %v752_v53 = vsub.s32 0, %v2439_v48  ;;  %v772_v60 = vsub.s32 4, %v2418_v32  ;;  %v1055_v9 = vshrl.u32 %v1905_v63, %v1054_v61  ;;  %v2454_v50 = vshll.u32 %v1047_v4, 8 }
  0xb9   : > { %v1845_v11 = vpop.eup %1844  ;;  %v1145_v41 = vand.u32 2139095040, %v2426_v21  ;;  %v1058_v22 = vor.u32 %v1057_v36, %v1056_v34  ;;  %v1061_v38 = vor.u32 %v1060_v29, %v1059_v56  ;;  %v1064_v27 = vor.u32 %v1063_v43, %v1062_v44 }
  0xba   : > { %v1847_v58 = vpop.eup %1846  ;;  %v682_v19 = vxor.u32 2147483648, %v1845_v11  ;;  %v1688_v6 = vmin.u32 %v752_v53, %v2439_v48  ;;  %v1067_v35 = vor.u32 %v1066_v49, %v1065_v51  ;;  %v1070_v59 = vor.u32 %v1069_v52, %v1068_v54 }
  0xbb   : > { %v679_v40 = vxor.u32 2147483648, %v1847_v58  ;;  %vm1071_vm7 = vcmp.lt.s32.totalorder %v2449_v28, 1  ;;  %vm1072_vm8 = vcmp.lt.s32.totalorder %v2449_v28, 2  ;;  %vm1073_vm10 = vcmp.lt.s32.totalorder %v2449_v28, 3 }
  0xbc   : > { %v683_v26 = vsel %vm681_vm15, %v682_v19, %v1847_v58  ;;  %v754_v30 = vclz %v1688_v6  ;;  %v890_v16 = vsel %vm888_vm6, %v682_v19, %v1847_v58  ;;  %vm1074_vm11 = vcmp.lt.s32.totalorder %v2449_v28, 4 }
  0xbd   : > { %v680_v17 = vsel %vm678_vm3, %v1845_v11, %v679_v40  ;;  %v887_v10 = vsel %vm885_vm2, %v1845_v11, %v679_v40  ;;  %v1075_v47 = vsel %vm1071_vm7, %v1055_v9, %v1058_v22  ;;  %v1076_v4 = vsel %vm1074_vm11, %v1064_v27, 2102212464 }
  0xbe   : > { %v684_v37 = vsel %vm677_vm9, %v680_v17, %v683_v26  ;;  %v1689_v42 = vadd.s32 4294967294, %v754_v30  ;;  %v891_v62 = vsel %vm884_vm5, %v887_v10, %v890_v16  ;;  %v1077_v39 = vsel %vm1073_vm10, %v1061_v38, %v1076_v4 }
  0xbf   : > { %v685_v24 = vsel %vm675_vm4, nan, %v684_v37  ;;  %v892_v61 = vsel %vm675_vm4, nan, %v891_v62  ;;  %v1080_v36 = vsel %vm1074_vm11, %v1067_v35, 920167782  ;;  %v1079_v52 = vsel %vm1071_vm7, %v1058_v22, %v1061_v38 }
  0xc0   : > { %vm1690_vm12 = vcmp.lt.s32.totalorder %v1689_v42, 0  ;;  %v998_v18 = vmul.f32 %v2420_v31, %v685_v24  ;;  %v1001_v20 = vmul.f32 %v2422_v13, %v892_v61  ;;  %v1005_v34 = vmul.f32 %v2422_v13, %v685_v24 }
  0xc1   : > { %v757_v56 = vsel %vm1690_vm12, 0, %v1689_v42  ;;  %v1007_v44 = vmul.f32 %v2420_v31, %v892_v61  ;;  %v1081_v53 = vsel %vm1073_vm10, %v1064_v27, %v1080_v36  ;;  %v1083_v11 = vsel %vm1071_vm7, %v1061_v38, %v1064_v27 }
  0xc2   : > { %v758_v29 = vsub.s32 32, %v757_v56  ;;  %v759_v51 = vshll.u32 %v2439_v48, %v757_v56  ;;  %v762_v43 = vsub.s32 4294967266, %v757_v56  ;;  %v1003_v49 = vsub.f32 %v998_v18, %v1001_v20 }
  0xc3   : > { %v1009_v54 = vadd.f32 %v1007_v44, %v1005_v34  ;;  %v1078_v22 = vsel %vm1072_vm8, %v1075_v47, %v1077_v39  ;;  %v1084_v26 = vsel %vm1074_vm11, %v1070_v59, 1326507024  ;;  %v1146_v37 = vshrl.u32 %v1145_v41, 23 }
  0xc4   : > { %v760_v9 = vshrl.u32 %v2433_v0, %v758_v29  ;;  %v763_v58 = vadd.s32 127, %v762_v43  ;;  %v1011_v19 = vmul.f32 %v1990_v23, %v1003_v49  ;;  %v1024_v6 = vmul.f32 %v1003_v49, %v2000_v33 }
  0xc5   : > { %v1013_v48 = vmul.f32 %v1009_v54, %v2000_v33  ;;  %v1022_v40 = vmul.f32 %v1990_v23, %v1009_v54  ;;  %v1082_v0 = vsel %vm1072_vm8, %v1079_v52, %v1081_v53  ;;  %v1085_v38 = vsel %vm1073_vm10, %v1067_v35, %v1084_v26 }
  0xc6   : > { %v761_v30 = vor.u32 %v760_v9, %v759_v51  ;;  %v764_v16 = vshll.u32 %v763_v58, 23  ;;  %v1086_v10 = vsel %vm1072_vm8, %v1083_v11, %v1085_v38  ;;  %vm688_vm13 = vcmp.lt.s32.totalorder %v2027_v57, 0 }
  0xc7   : > { %v1015_v27 = vadd.f32 %v1013_v48, %v1011_v19  ;;  %v1026_v17 = vsub.f32 %v1022_v40, %v1024_v6  ;;  %v2510_v59 = vmul.u32.u64.low %v2454_v50, %v1086_v10  ;;  %v2511_v24 = vmul.u32.u64.high %v2454_v50, %v1086_v10, %v2510_v59 }
  0xc8   : > { %v765_v42 = vor.u32 4788187, %v764_v16  ;;  %v768_v62 = vcvt.s32.f32 %v761_v30  ;;  %v2516_v4 = vmul.u32.u64.low %v2454_v50, %v1082_v0  ;;  %v2517_v35 = vmul.u32.u64.high %v2454_v50, %v1082_v0, %v2516_v4 }
  0xc9   : > { %v1017_v61 = vmul.f32 %v1015_v27, %v2140_v12  ;;  %v1028_v47 = vmul.f32 %v1026_v17, %v2140_v12  ;;  %v1710_v18 = vadd.s32 4294967169, %v1146_v37  ;;  %v773_v41 = vsel %vm688_vm13, %v772_v60, %v2418_v32 }
  0xca   : > { %v766_v28 = vand.u32 2147483647, %v765_v42  ;;  %v1094_v34 = vmul.u32 %v2454_v50, %v1078_v22  ;;  %vm1096_vm14 = vc.u32 %v2511_v24, %v2516_v4  ;;  %vm687_vm0 = vcmp.le.f32.partialorder %v686_v2, 0.7853982 }
  0xcb   : > { %1699 = vst [vmem:[%s2363_s8 + $0x10] sm:$0xff] %v1017_v61  ;;  %1701 = vst [vmem:[%s2368_s9 + $0x10] sm:$0xff] %v1028_v47  ;;  %v1152_v56 = vadd.s32 1, %v1710_v18  ;;  %v1097_v44 = vadd.s32 1, %v2517_v35  ;;  %v1149_v39 = vand.u32 8388607, %v1142_v46  ;;  %vm778_vm15 = vweird.f32 %v2027_v57 }
  0xcc   : > { %v769_v20 = vmul.f32 %v768_v62, %v766_v28  ;;  %v775_v29 = vsel %vm687_vm0, 0, %v773_v41 }
  0xcd   : > { %vm1153_vm1 = vcmp.gt.s32.totalorder %v1152_v56, 0  ;;  %v1098_v32 = vsel %vm1096_vm14, %v1097_v44, %v2517_v35  ;;  %v2540_v54 = vand.u32 3, %v775_v29  ;;  %v986_v2 = vadd.s32 3, %v775_v29 }
  0xce   : > { %v770_v36 = vxor.u32 2147483648, %v769_v20  ;;  %v1154_v60 = vsel %vm1153_vm1, %v1152_v56, 0  ;;  %v1099_v51 = vadd.s32 %v1098_v32, %v1094_v34  ;;  %v1150_v52 = vor.u32 8388608, %v1149_v39 }
  0xcf   : > { %v1156_v43 = vand.u32 31, %v1154_v60  ;;  %v1155_v40 = vshrl.u32 %v1154_v60, 5  ;;  %vm780_vm9 = vcmp.lt.s32.totalorder %v2540_v54, 2  ;;  %vm781_vm3 = vcmp.eq.s32.totalorder %v2540_v54, 0 }
  0xd0   : > { %v771_v50 = vsel %vm688_vm13, %v770_v36, %v769_v20  ;;  %v1100_v53 = vadd.s32 536870912, %v1099_v51  ;;  %vm784_vm2 = vcmp.eq.s32.totalorder %v2540_v54, 2  ;;  %vm1041_vm14 = vcmp.lt.s32.totalorder %v2147_v15, 0 }
  0xd1   : > { %v774_v49 = vsel %vm687_vm0, %v2027_v57, %v771_v50  ;;  %v1157_v11 = vsub.s32 32, %v1156_v43  ;;  %v1159_v9 = vshll.u32 %v1905_v63, %v1156_v43  ;;  %v1162_v58 = vshll.u32 %v1906_v1, %v1156_v43 }
  0xd2   : > { %1848 = vcosq.f32 %v774_v49  ;;  %v1165_v19 = vshll.u32 %v1907_v3, %v1156_v43  ;;  %v1168_v6 = vshll.u32 %v1908_v5, %v1156_v43  ;;  %v2546_v48 = vshrl.u32 %v1100_v53, 30 }
  0xd3   : > { %1850 = vsinq.f32 %v774_v49  ;;  %v1160_v22 = vshrl.u32 %v1906_v1, %v1157_v11  ;;  %v1163_v26 = vshrl.u32 %v1907_v3, %v1157_v11  ;;  %v1166_v30 = vshrl.u32 %v1908_v5, %v1157_v11 }
  0xd4   : > { %v1169_v16 = vshrl.u32 %v1909_v7, %v1157_v11  ;;  %v1171_v0 = vshll.u32 %v1909_v7, %v1156_v43  ;;  %v1172_v38 = vshrl.u32 %v1910_v14, %v1157_v11  ;;  %v1102_v27 = vshll.u32 %v2546_v48, 30 }
  0xd5   : > { %v1161_v17 = vor.u32 %v1160_v22, %v1159_v9  ;;  %v1164_v1 = vor.u32 %v1163_v26, %v1162_v58  ;;  %v1167_v10 = vor.u32 %v1166_v30, %v1165_v19  ;;  %v987_v5 = vand.u32 3, %v986_v2 }
  0xd6   : > { %v1170_v3 = vor.u32 %v1169_v16, %v1168_v6  ;;  %v1173_v37 = vor.u32 %v1172_v38, %v1171_v0  ;;  %v2558_v42 = vsub.s32 %v1099_v51, %v1102_v27  ;;  %vm1174_vm4 = vcmp.lt.s32.totalorder %v1155_v40, 1 }
  0xd7   : > { %vm1176_vm5 = vcmp.lt.s32.totalorder %v1155_v40, 3  ;;  %v1158_v7 = vshrl.u32 %v1905_v63, %v1157_v11  ;;  %vm1177_vm6 = vcmp.lt.s32.totalorder %v1155_v40, 4  ;;  %v1190_v14 = vshll.u32 %v1150_v52, 8 }
  0xd8   : > { %v1105_v62 = vsub.s32 0, %v2558_v42  ;;  %vm1175_vm7 = vcmp.lt.s32.totalorder %v1155_v40, 2  ;;  %v1179_v59 = vsel %vm1177_vm6, %v1167_v10, 2102212464  ;;  %v1183_v61 = vsel %vm1177_vm6, %v1170_v3, 920167782 }
  0xd9   : > { %v1182_v47 = vsel %vm1174_vm4, %v1161_v17, %v1164_v1  ;;  %v1184_v35 = vsel %vm1176_vm5, %v1167_v10, %v1183_v61  ;;  %v1186_v28 = vsel %vm1174_vm4, %v1164_v1, %v1167_v10  ;;  %v1187_v18 = vsel %vm1177_vm6, %v1173_v37, 1326507024 }
  0xda   : > { %vm988_vm8 = vcmp.lt.s32.totalorder %v987_v5, 2  ;;  %vm989_vm10 = vcmp.eq.s32.totalorder %v987_v5, 0  ;;  %vm992_vm11 = vcmp.eq.s32.totalorder %v987_v5, 2  ;;  %v1707_v63 = vmin.u32 %v1105_v62, %v2558_v42 }
  0xdb   : > { %v1178_v56 = vsel %vm1174_vm4, %v1158_v7, %v1161_v17  ;;  %v1180_v44 = vsel %vm1176_vm5, %v1164_v1, %v1179_v59  ;;  %v1188_v39 = vsel %vm1176_vm5, %v1170_v3, %v1187_v18  ;;  %v1185_v32 = vsel %vm1175_vm7, %v1182_v47, %v1184_v35 }
  0xdc   : > { %v1849_v41 = vpop.eup %1848  ;;  %v1107_v29 = vclz %v1707_v63  ;;  %v1189_v60 = vsel %vm1175_vm7, %v1186_v28, %v1188_v39  ;;  %v1181_v11 = vsel %vm1175_vm7, %v1178_v56, %v1180_v44  ;;  %v1095_v0 = vadd.s32 %v2516_v4, %v2511_v24 }
  0xdd   : > { %v1851_v20 = vpop.eup %1850  ;;  %v785_v34 = vxor.u32 2147483648, %v1849_v41  ;;  %v2574_v43 = vmul.u32.u64.low %v1190_v14, %v1189_v60  ;;  %v2575_v49 = vmul.u32.u64.high %v1190_v14, %v1189_v60, %v2574_v43  ;;  %v1197_v27 = vmul.u32 %v1190_v14, %v1181_v11 }
  0xde   : > { %v782_v36 = vxor.u32 2147483648, %v1851_v20  ;;  %v1708_v53 = vadd.s32 4294967294, %v1107_v29  ;;  %v2584_v19 = vmul.u32.u64.low %v1190_v14, %v1185_v32  ;;  %v2585_v6 = vmul.u32.u64.high %v1190_v14, %v1185_v32, %v2584_v19 }
  0xdf   : > { %v786_v50 = vsel %vm784_vm2, %v785_v34, %v1851_v20  ;;  %v994_v51 = vsel %vm992_vm11, %v785_v34, %v1851_v20  ;;  %v1125_v34 = vsub.s32 4, %v2546_v48  ;;  %vm1040_vm0 = vcmp.le.f32.partialorder %v1039_v45, 0.7853982 }
  0xe0   : > { %v783_v2 = vsel %vm781_vm3, %v1849_v41, %v782_v36  ;;  %v991_v52 = vsel %vm989_vm10, %v1849_v41, %v782_v36  ;;  %vm1709_vm12 = vcmp.lt.s32.totalorder %v1708_v53, 0  ;;  %vm1199_vm13 = vc.u32 %v2575_v49, %v2584_v19 }
  0xe1   : > { %v787_v9 = vsel %vm780_vm9, %v783_v2, %v786_v50  ;;  %v995_v58 = vsel %vm988_vm8, %v991_v52, %v994_v51  ;;  %v1110_v38 = vsel %vm1709_vm12, 0, %v1708_v53  ;;  %v1200_v37 = vadd.s32 1, %v2585_v6 }
  0xe2   : > { %v788_v22 = vsel %vm778_vm15, nan, %v787_v9  ;;  %v996_v26 = vsel %vm778_vm15, nan, %v995_v58  ;;  %v1111_v10 = vsub.s32 32, %v1110_v38  ;;  %v1112_v57 = vshll.u32 %v2558_v42, %v1110_v38 }
  0xe3   : > { %v999_v30 = vmul.f32 %v2420_v31, %v788_v22  ;;  %v1002_v40 = vmul.f32 %v2422_v13, %v996_v26  ;;  %v1006_v16 = vmul.f32 %v2422_v13, %v788_v22  ;;  %v1008_v54 = vmul.f32 %v2420_v31, %v996_v26 }
  0xe4   : > { %v1115_v3 = vsub.s32 4294967266, %v1110_v38  ;;  %v1113_v4 = vshrl.u32 %v1095_v0, %v1111_v10  ;;  %v1201_v14 = vsel %vm1199_vm13, %v1200_v37, %v2585_v6  ;;  %v1126_v29 = vsel %vm1041_vm14, %v1125_v34, %v2546_v48 }
  0xe5   : > { %v1004_v17 = vsub.f32 %v999_v30, %v1002_v40  ;;  %v1010_v1 = vadd.f32 %v1008_v54, %v1006_v16  ;;  %v1202_v42 = vadd.s32 %v1201_v14, %v1197_v27  ;;  %v1128_v51 = vsel %vm1040_vm0, 0, %v1126_v29 }
  0xe6   : > { %v1116_v7 = vadd.s32 127, %v1115_v3  ;;  %v1114_v61 = vor.u32 %v1113_v4, %v1112_v57  ;;  %v1338_v52 = vadd.s32 3, %v1128_v51  ;;  %v1198_v11 = vadd.s32 %v2584_v19, %v2575_v49 }
  0xe7   : > { %v1012_v5 = vmul.f32 %v1993_v25, %v1004_v17  ;;  %v1014_v13 = vmul.f32 %v1010_v1, %v2000_v33  ;;  %v1023_v31 = vmul.f32 %v1993_v25, %v1010_v1  ;;  %v1025_v24 = vmul.f32 %v1004_v17, %v2000_v33 }
  0xe8   : > { %v1117_v47 = vshll.u32 %v1116_v7, 23  ;;  %v1203_v18 = vadd.s32 536870912, %v1202_v42  ;;  %v1121_v63 = vcvt.s32.f32 %v1114_v61  ;;  %v1132_v45 = vand.u32 3, %v1128_v51 }
  0xe9   : > { %v1016_v62 = vadd.f32 %v1014_v13, %v1012_v5  ;;  %v1027_v59 = vsub.f32 %v1023_v31, %v1025_v24  ;;  %v1339_v48 = vand.u32 3, %v1338_v52  ;;  %vm1131_vm5 = vweird.f32 %v2147_v15 }
  0xea   : > { %v1118_v41 = vor.u32 4788187, %v1117_v47  ;;  %v2609_v20 = vshrl.u32 %v1203_v18, 30  ;;  %vm1134_vm9 = vcmp.eq.s32.totalorder %v1132_v45, 0  ;;  %vm1137_vm3 = vcmp.eq.s32.totalorder %v1132_v45, 2 }
  0xeb   : > { %v1018_v35 = vmul.f32 %v1016_v62, %v2380_v8  ;;  %v1029_v28 = vmul.f32 %v1027_v59, %v2380_v8  ;;  %vm1344_vm15 = vcmp.eq.s32.totalorder %v1339_v48, 2  ;;  %vm1341_vm4 = vcmp.eq.s32.totalorder %v1339_v48, 0 }
  0xec   : > { %v1119_v33 = vand.u32 2147483647, %v1118_v41  ;;  %v1205_v56 = vshll.u32 %v2609_v20, 30  ;;  %vm1133_vm2 = vcmp.lt.s32.totalorder %v1132_v45, 2  ;;  %vm1340_vm6 = vcmp.lt.s32.totalorder %v1339_v48, 2 }
  0xed   : > { %1700 = vst [vmem:[%s2363_s8 + $0x18] sm:$0xff] %v1018_v35  ;;  %1702 = vst [vmem:[%s2368_s9 + $0x18] sm:$0xff] %v1029_v28  ;;  %v1453_v3 = vstv %s2618_s12  ;;  %v1456_v37 = vstv %s1705_s13  ;;  %v1228_v31 = vsub.s32 4, %v2609_v20  ;;  %vm1144_vm7 = vcmp.lt.s32.totalorder %v2426_v21, 0 }
  0xee   : > { %v1122_v44 = vmul.f32 %v1121_v63, %v1119_v33  ;;  %v1206_v39 = vsub.s32 %v1202_v42, %v1205_v56  ;;  %vm1143_vm8 = vcmp.le.f32.partialorder %v1142_v46, 0.7853982 }
  0xef   : > { %v1229_v35 = vsel %vm1144_vm7, %v1228_v31, %v2609_v20 }
  0xf0   : > { %v1123_v36 = vxor.u32 2147483648, %v1122_v44  ;;  %v1208_v32 = vsub.s32 0, %v1206_v39  ;;  %v1231_v34 = vsel %vm1143_vm8, 0, %v1229_v35 }
  0xf2   : > { %v1124_v60 = vsel %vm1041_vm14, %v1123_v36, %v1122_v44  ;;  %v1711_v43 = vmin.u32 %v1208_v32, %v1206_v39  ;;  %v1235_v32 = vand.u32 3, %v1231_v34 }
  0xf3   : > { %v1127_v50 = vsel %vm1040_vm0, %v2147_v15, %v1124_v60 }
  0xf4   : > { %1852 = vcosq.f32 %v1127_v50  ;;  %v1210_v2 = vclz %v1711_v43  ;;  %vm1240_vm10 = vcmp.eq.s32.totalorder %v1235_v32, 2  ;;  %vm1237_vm12 = vcmp.eq.s32.totalorder %v1235_v32, 0 }
  0xf5   : > { %1854 = vsinq.f32 %v1127_v50  ;;  %vm1236_vm14 = vcmp.lt.s32.totalorder %v1235_v32, 2 }
  0xf6   : > { %v1712_v53 = vadd.s32 4294967294, %v1210_v2 }
  0xf8   : > { %vm1713_vm1 = vcmp.lt.s32.totalorder %v1712_v53, 0 }
  0xf9   : > { %v1213_v9 = vsel %vm1713_vm1, 0, %v1712_v53  ;;  %vm1234_vm1 = vweird.f32 %v2426_v21 }
  0xfa   : > { %v1214_v58 = vsub.s32 32, %v1213_v9  ;;  %v1215_v6 = vshll.u32 %v1206_v39, %v1213_v9  ;;  %v1218_v22 = vsub.s32 4294967266, %v1213_v9  ;;  %v1442_v39 = vadd.s32 3, %v1231_v34 }
  0xfc   : > { %v1216_v26 = vshrl.u32 %v1198_v11, %v1214_v58  ;;  %v1219_v30 = vadd.s32 127, %v1218_v22  ;;  %v1443_v60 = vand.u32 3, %v1442_v39 }
  0xfe   : > { %v1853_v40 = vpop.eup %1852  ;;  %v1217_v0 = vor.u32 %v1216_v26, %v1215_v6  ;;  %v1220_v38 = vshll.u32 %v1219_v30, 23  ;;  %vm1448_vm11 = vcmp.eq.s32.totalorder %v1443_v60, 2  ;;  %vm1445_vm13 = vcmp.eq.s32.totalorder %v1443_v60, 0 }
  0xff   : > { %v1855_v16 = vpop.eup %1854  ;;  %v1138_v54 = vxor.u32 2147483648, %v1853_v40  ;;  %vm1444_vm0 = vcmp.lt.s32.totalorder %v1443_v60, 2 }
 0x100   : > { %v1135_v49 = vxor.u32 2147483648, %v1855_v16  ;;  %v1221_v27 = vor.u32 4788187, %v1220_v38  ;;  %v1224_v17 = vcvt.s32.f32 %v1217_v0 }
 0x101   : > { %v1139_v19 = vsel %vm1137_vm3, %v1138_v54, %v1855_v16  ;;  %v1346_v1 = vsel %vm1344_vm15, %v1138_v54, %v1855_v16 }
 0x102   : > { %v1136_v10 = vsel %vm1134_vm9, %v1853_v40, %v1135_v49  ;;  %v1343_v57 = vsel %vm1341_vm4, %v1853_v40, %v1135_v49  ;;  %v1222_v13 = vand.u32 2147483647, %v1221_v27 }
 0x103   : > { %v1140_v5 = vsel %vm1133_vm2, %v1136_v10, %v1139_v19  ;;  %v1347_v24 = vsel %vm1340_vm6, %v1343_v57, %v1346_v1 }
 0x104   : > { %v1141_v4 = vsel %vm1131_vm5, nan, %v1140_v5  ;;  %v1348_v7 = vsel %vm1131_vm5, nan, %v1347_v24  ;;  %v1225_v14 = vmul.f32 %v1224_v17, %v1222_v13 }
 0x105   : > { %v1454_v62 = vmul.f32 %v1453_v3, %v1141_v4  ;;  %v1457_v59 = vmul.f32 %v1456_v37, %v1348_v7  ;;  %v1461_v42 = vmul.f32 %v1456_v37, %v1141_v4  ;;  %v1463_v61 = vmul.f32 %v1453_v3, %v1348_v7 }
 0x106   : > { %v1226_v47 = vxor.u32 2147483648, %v1225_v14 }
 0x107   : > { %v1459_v28 = vsub.f32 %v1454_v62, %v1457_v59  ;;  %v1465_v18 = vadd.f32 %v1463_v61, %v1461_v42 }
 0x108   : > { %v1227_v41 = vsel %vm1144_vm7, %v1226_v47, %v1225_v14 }
 0x109   : > { %v1467_v15 = vmul.f32 %v1990_v23, %v1459_v28  ;;  %v1480_v63 = vmul.f32 %v1459_v28, %v2122_v55  ;;  %v1230_v33 = vsel %vm1143_vm8, %v2426_v21, %v1227_v41  ;;  %v1469_v56 = vmul.f32 %v1465_v18, %v2122_v55 }
 0x10a   : > { %v1478_v44 = vmul.f32 %v1990_v23, %v1465_v18  ;;  %1856 = vcosq.f32 %v1230_v33 }
 0x10b   : > { %1858 = vsinq.f32 %v1230_v33  ;;  %v1471_v46 = vadd.f32 %v1469_v56, %v1467_v15 }
 0x10c   : > { %v1482_v20 = vsub.f32 %v1478_v44, %v1480_v63 }
 0x10d   : > { %v1473_v36 = vmul.f32 %v1471_v46, %v2140_v12 }
 0x10e   : > { %v1484_v29 = vmul.f32 %v1482_v20, %v2140_v12 }
 0x10f   : > { %1722 = vst [vmem:[%s2363_s8 + $0x20] sm:$0xff] %v1473_v36 }
 0x110   : > { %1724 = vst [vmem:[%s2368_s9 + $0x20] sm:$0xff] %v1484_v29 }
 0x114   : > { %v1857_v50 = vpop.eup %1856 }
 0x115   : > { %v1859_v51 = vpop.eup %1858  ;;  %v1241_v43 = vxor.u32 2147483648, %v1857_v50 }
 0x116   : > { %v1238_v23 = vxor.u32 2147483648, %v1859_v51 }
 0x117   : > { %v1242_v2 = vsel %vm1240_vm10, %v1241_v43, %v1859_v51  ;;  %v1450_v52 = vsel %vm1448_vm11, %v1241_v43, %v1859_v51 }
 0x118   : > { %v1239_v53 = vsel %vm1237_vm12, %v1857_v50, %v1238_v23  ;;  %v1447_v12 = vsel %vm1445_vm13, %v1857_v50, %v1238_v23 }
 0x119   : > { %v1243_v11 = vsel %vm1236_vm14, %v1239_v53, %v1242_v2  ;;  %v1451_v45 = vsel %vm1444_vm0, %v1447_v12, %v1450_v52 }
 0x11a   : > { %v1244_v9 = vsel %vm1234_vm1, nan, %v1243_v11  ;;  %v1452_v48 = vsel %vm1234_vm1, nan, %v1451_v45 }
 0x11b   : > { %v1455_v58 = vmul.f32 %v1453_v3, %v1244_v9  ;;  %v1458_v6 = vmul.f32 %v1456_v37, %v1452_v48  ;;  %v1462_v22 = vmul.f32 %v1456_v37, %v1244_v9  ;;  %v1464_v26 = vmul.f32 %v1453_v3, %v1452_v48 }
 0x11d   : > { %v1460_v30 = vsub.f32 %v1455_v58, %v1458_v6  ;;  %v1466_v40 = vadd.f32 %v1464_v26, %v1462_v22 }
 0x11f   : > { %v1468_v21 = vmul.f32 %v1993_v25, %v1460_v30  ;;  %v1470_v16 = vmul.f32 %v1466_v40, %v2122_v55  ;;  %v1479_v54 = vmul.f32 %v1993_v25, %v1466_v40  ;;  %v1481_v0 = vmul.f32 %v1460_v30, %v2122_v55 }
 0x121   : > { %v1472_v38 = vadd.f32 %v1470_v16, %v1468_v21  ;;  %v1483_v49 = vsub.f32 %v1479_v54, %v1481_v0 }
 0x123   : > { %v1474_v19 = vmul.f32 %v1472_v38, %v2380_v8  ;;  %v1485_v27 = vmul.f32 %v1483_v49, %v2380_v8 }
 0x125   : > { %1723 = vst [vmem:[%s2363_s8 + $0x28] sm:$0xff] %v1474_v19  ;;  %1725 = vst [vmem:[%s2368_s9 + $0x28] sm:$0xff] %v1485_v27 }
 0x126   : > { %s1732_s16 = sshll.u32 %s1902_s21, 8  ;;  %s1524_s17 = sshll.u32 %s2363_s8, 4  ;;  %s1525_s17 = int_to_ptr.vmem [resolvable:$true] %s1524_s17 }
 0x127   : > { %s1507_s23 = scalar_lea.hbm %s2707_s1, %s1732_s16  ;;  %s1911_s24 = smov 256  }
 0x128   : > { %1759 = sst [smem:[#allocation9]] (%p1980_p7), %s1911_s24  ;;  %s1912_s28 = smov 512  }
 0x129   : > { %1760 = sst [smem:[#allocation9 + $0x1]] (%p1980_p7), %s1912_s28  ;;  %s1913_s29 = smov 2  }
 0x12a   : > { %1761 = sst [smem:[#allocation9 + $0x2]] (%p1980_p7), %s1913_s29  ;;  %s1914_s30 = smov 128  }
 0x12b   : > { %1762 = sst [smem:[#allocation9 + $0x3]] (%p1980_p7), %s1914_s30  ;;  %s1915_s3 = smov 8  }
 0x12c   : > { %1763 = sst [smem:[#allocation9 + $0x4]] (%p1980_p7), %s1914_s30  ;;  %s1916_s4 = smov [#allocation8]  }
 0x12d   : > { %1764 = sst [smem:[#allocation9 + $0x5]] (%p1980_p7), %s1915_s3  ;;  %s1917_s5 = smov 0  }
 0x12e   : > { %1765 = dma.general (%p1980_p7), %s1525_s17, 768, %s1507_s23, %s1490_s14, %s1916_s4, [#allocation9], %s1917_s5, 0  }
 0x12f   : > { %s1552_s10 = scalar_lea.hbm %s2708_s2, %s1732_s16  ;;  %s1569_s11 = sshll.u32 %s2368_s9, 4  ;;  %s1570_s11 = int_to_ptr.vmem [resolvable:$true] %s1569_s11 }
 0x130   : > { %s1918_s12 = smov 256   ;;  %s1919_s13 = smov 512  }
 0x131   : > { %1766 = sst [smem:[#allocation11]] (%p1980_p7), %s1918_s12  ;;  %s1920_s14 = smov 2  }
 0x132   : > { %1767 = sst [smem:[#allocation11 + $0x1]] (%p1980_p7), %s1919_s13  ;;  %s1921_s17 = smov 128  }
 0x133   : > { %1768 = sst [smem:[#allocation11 + $0x2]] (%p1980_p7), %s1920_s14  ;;  %s1922_s18 = smov 8  }
 0x134   : > { %1769 = sst [smem:[#allocation11 + $0x3]] (%p1980_p7), %s1921_s17  ;;  %s1923_s16 = smov [#allocation10]  }
 0x135   : > { %1770 = sst [smem:[#allocation11 + $0x4]] (%p1980_p7), %s1921_s17  ;;  %s1924_s9 = smov 0  }
 0x136   : > { %1771 = sst [smem:[#allocation11 + $0x5]] (%p1980_p7), %s1922_s18 }
 0x137   : > { %1772 = dma.general (%p1980_p7), %s1570_s11, 768, %s1552_s10, %s1495_s15, %s1923_s16, [#allocation11], %s1924_s9, 0  }
 0x138 PF: > { %p1782_p11 = scmp.ge.s32.totalorder %s1902_s21, 1  ;;  %s1597_s0 = sand.u32 1, %s1894_s19  }
 0x139   : > { %s1598_s23 = scalar_lea.sflag [#allocation5], %s1597_s0 }
 0x13a   : > { %p1776_p12 = pnand %p1782_p11, %p1984_p9 }
 0x13c   : > { %1885 = dma.done.wait (!%p1776_p12), %s1598_s23, 768  }
 0x13d   : > { %1887 = vsyncadd (!%p1776_p12), %s1598_s23, 4294966528  ;;  %s1607_s24 = scalar_lea.sflag [#allocation7], %s1597_s0 }
 0x13e   : > { %1889 = dma.done.wait (!%p1776_p12), %s1607_s24, 768  }
 0x13f   : > { %1891 = vsyncadd (!%p1776_p12), %s1607_s24, 4294966528  ;;  %p20_p13 = scmp.ge.s32.totalorder %s1969_s22, 3   ;;  %s2717_s19 = smov %s1898_s20 }
 0x140   : > { %s2718_s20 = smov %s1978_s25  ;;  %s2719_s21 = smov %s1969_s22 }
 0x141   :  { %22 = sbr.rel (!%p20_p13) target bundleno = 17 (0x11), region = 75 }
 0x148   :  { %1612 = vsyncpa [#allocation5], 1 }
 0x149   :  { %1614 = vsyncpa [#allocation5 + $0x1], 1 }
 0x14a   :  { %1615 = vsyncpa [#allocation7], 1 }
 0x14b   :  { %1617 = vsyncpa [#allocation7 + $0x1], 1 }

</bundles_post_ra>
